<compile_context>
chip_gen: v7x
topology: tpu7x:2x2x1
jax: 0.10.0
libtpu: 0.0.40
codegen_flags: <defaults>
</compile_context>

<pallas_src>
import functools

import jax
import jax.numpy as jnp
from jax.experimental import pallas as pl
from jax.experimental.pallas import tpu as pltpu


# ----------------------------------------------------------------------------
# shape helpers
# ----------------------------------------------------------------------------
def conv2d_size(size, kernel_size=3, stride=1):
    return (size - kernel_size) // stride + 1


def _dims(h, w):
    OH1, OW1 = conv2d_size(h, 8, 4), conv2d_size(w, 8, 4)
    OH2, OW2 = conv2d_size(OH1, 4, 2), conv2d_size(OW1, 4, 2)
    OH3, OW3 = conv2d_size(OH2, 3, 1), conv2d_size(OW2, 3, 1)
    assert OH3 >= 1 and OW3 >= 1, "input too small for the DQN conv stack"
    return (OH1, OW1, OH2, OW2, OH3, OW3)


def _layout(dims):
    """Row-layout constants shared by the wrapper and the kernel."""
    OH1, OW1, OH2, OW2, OH3, OW3 = dims
    halfw = (OW1 + 1) // 2            # conv1 output columns packed 2-per-row
    P1 = (OH2 + 2) * halfw            # rows per conv1 parity-h plane (padded)
    Lr3 = (OH3 - 1) * halfw + OW3     # conv3 padded-width output rows
    Lr2 = 2 * halfw + 2 + Lr3         # conv2 padded-width output rows
    return halfw, P1, Lr2, Lr3


# ----------------------------------------------------------------------------
# fused forward kernel (one grid step == one batch sample)
# ----------------------------------------------------------------------------
def _dqn_kernel(p1_ref, w1_ref, b1_ref, w2_ref, b2_ref, w3_ref, b3_ref,
                wl1_ref, bl1_ref, wl2_ref, bl2_ref, o_ref,
                h1_ref, h2_ref, h3_ref, hf_ref, *, dims):
    OH1, OW1, OH2, OW2, OH3, OW3 = dims
    halfw, P1, Lr2, Lr3 = _layout(dims)
    bf16 = jnp.bfloat16

    # ---- conv1: one matmul, bias + ReLU --------------------------------------
    # p1 rows: (oh1 parity a, oh1//2, ow1//2); 128 feats = [patch(ow even) |
    # patch(ow odd)].  w1 is block-diagonal so h1 lanes come out as
    # [32 ch @ ow even | 32 ch @ ow odd].
    a1 = jnp.dot(p1_ref[0], w1_ref[...], preferred_element_type=jnp.float32)
    h1_ref[...] = jnp.maximum(a1 + b1_ref[...], 0.0)

    # ---- conv2: 8 shifted matmuls, f32 register accumulation -----------------
    acc2 = jnp.zeros((Lr2, 64), jnp.float32)
    for i in range(4):                      # kernel row
        ia, iq = i % 2, i // 2
        for jq in range(2):                 # kernel column pair (j = 2*jq + b)
            s = ia * P1 + iq * halfw + jq
            lhs = h1_ref[s:s + Lr2, :].astype(bf16)
            w = w2_ref[(i * 2 + jq) * 64:(i * 2 + jq + 1) * 64, :]
            acc2 = acc2 + jnp.dot(lhs, w, preferred_element_type=jnp.float32)
    h2_ref[...] = jnp.maximum(acc2 + b2_ref[...], 0.0)

    # ---- conv3: 9 shifted matmuls (stride 1) ----------------------------------
    acc3 = jnp.zeros((Lr3, 64), jnp.float32)
    for i in range(3):
        for j in range(3):
            s = i * halfw + j
            lhs = h2_ref[s:s + Lr3, :].astype(bf16)
            w = w3_ref[(i * 3 + j) * 64:(i * 3 + j + 1) * 64, :]
            acc3 = acc3 + jnp.dot(lhs, w, preferred_element_type=jnp.float32)
    h3_ref[...] = jnp.maximum(acc3 + b3_ref[...], 0.0)

    # ---- flatten valid (oh3, ow3) rows -> lane r*64 + c ------------------------
    # (lin1 weight columns were permuted at init to match this order, which is
    #  equivalent to torch's NCHW x.view(batch, -1).)
    for oh3 in range(OH3):
        for ow3 in range(OW3):
            r = oh3 * OW3 + ow3
            src = oh3 * halfw + ow3
            hf_ref[:, r * 64:(r + 1) * 64] = h3_ref[src:src + 1, :]

    # ---- linear1 + ReLU, linear2 as epilogue ----------------------------------
    a4 = jnp.dot(hf_ref[...].astype(bf16), wl1_ref[...],
                 preferred_element_type=jnp.float32)
    z = jnp.maximum(a4 + bl1_ref[...], 0.0)
    a5 = jnp.dot(z.astype(bf16), wl2_ref[...],
                 preferred_element_type=jnp.float32)
    o_ref[0] = a5 + bl2_ref[...]


def _dqn_pallas(p1, kp, dims, n_actions):
    N, R1, _ = p1.shape
    OH1, OW1, OH2, OW2, OH3, OW3 = dims
    halfw, P1, Lr2, Lr3 = _layout(dims)
    lin_in = OH3 * OW3 * 64

    const = lambda i: (0, 0)
    weight_order = ("w1", "b1", "w2", "b2", "w3", "b3", "wl1", "bl1", "wl2", "bl2")
    in_specs = [pl.BlockSpec((1, R1, 128), lambda i: (i, 0, 0))]
    in_specs += [pl.BlockSpec(kp[k].shape, const) for k in weight_order]

    out = pl.pallas_call(
        functools.partial(_dqn_kernel, dims=dims),
        out_shape=jax.ShapeDtypeStruct((N, 1, n_actions), jnp.float32),
        grid=(N,),
        in_specs=in_specs,
        out_specs=pl.BlockSpec((1, 1, n_actions), lambda i: (i, 0, 0)),
        scratch_shapes=[
            pltpu.VMEM((2 * P1, 64), jnp.float32),   # conv1 activations (2 planes)
            pltpu.VMEM((Lr2, 64), jnp.float32),      # conv2 activations (padded w)
            pltpu.VMEM((Lr3, 64), jnp.float32),      # conv3 activations (padded w)
            pltpu.VMEM((1, lin_in), jnp.float32),    # flattened lin1 input
        ],
        compiler_params=pltpu.CompilerParams(
            dimension_semantics=("parallel",)),
    )(p1, *[kp[k] for k in weight_order])
    return out.reshape(N, n_actions)


# ----------------------------------------------------------------------------
# wrapper-side conv1 patch extraction (input preprocessing, runs once / fwd)
# ----------------------------------------------------------------------------
def build_conv1_patches(x, dims):
    """x: (N, 1, H, W) -> (N, 2*(OH2+2)*halfw, 128) bf16.

    Rows ordered (oh1 parity, oh1//2, ow1//2); the 128 features per row are
    the 8x8 input patch for ow1 even (64) followed by ow1 odd (64), ordered
    (i*8 + j), zero-padded outside the valid conv1 output range."""
    OH1, OW1, OH2 = dims[0], dims[1], dims[2]
    N, _, h, w = x.shape
    x = x.reshape(N, h, w)
    if h % 4 == 0 and w % 4 == 0:
        # structured extraction: kernel 8 = 2 * stride 4  -> only 4 slices
        xr = x.reshape(N, h // 4, 4, w // 4, 4)
        parts = [xr[:, a:a + OH1, :, b:b + OW1, :]
                 for a in range(2) for b in range(2)]
        p = jnp.stack(parts, axis=1).reshape(N, 2, 2, OH1, 4, OW1, 4)
        # dims (n, a, b, oh1, p, ow1, q) -> (n, oh1, ow1, a, p, b, q)
        p = p.transpose(0, 3, 5, 1, 4, 2, 6).reshape(N, OH1, OW1, 64)
    else:  # generic fallback
        cols = [x[:, i:i + 4 * OH1:4, j:j + 4 * OW1:4]
                for i in range(8) for j in range(8)]
        p = jnp.stack(cols, axis=-1)                       # (N, OH1, OW1, 64)
    halfw = (OW1 + 1) // 2
    yrows = OH2 + 2
    p = jnp.pad(p, ((0, 0), (0, 2 * yrows - OH1), (0, 2 * halfw - OW1), (0, 0)))
    # (n, 2*yrows, 2*halfw, 64) -> rows (a, y, x), feats (col-parity b, 64)
    p = p.reshape(N, yrows, 2, halfw, 2, 64).transpose(0, 2, 1, 3, 4, 5)
    p = p.reshape(N, 2 * yrows * halfw, 128)
    return p.astype(jnp.bfloat16)


# ----------------------------------------------------------------------------
# parameters: torch-layout init + one-time kernel-layout preparation
# ----------------------------------------------------------------------------
def init_params(key, h, w, n_actions):
    OH1, OW1, OH2, OW2, OH3, OW3 = _dims(h, w)
    lin_1 = OH3 * OW3
    ks = jax.random.split(key, 10)

    def w_init(k, shape, fan_in):
        return jax.random.normal(k, shape, jnp.float32) / jnp.sqrt(fan_in)

    return {
        "conv1_w": w_init(ks[0], (32, 1, 8, 8), 1 * 8 * 8),
        "conv1_b": w_init(ks[1], (32,), 1 * 8 * 8),
        "conv2_w": w_init(ks[2], (64, 32, 4, 4), 32 * 4 * 4),
        "conv2_b": w_init(ks[3], (64,), 32 * 4 * 4),
        "conv3_w": w_init(ks[4], (64, 64, 3, 3), 64 * 3 * 3),
        "conv3_b": w_init(ks[5], (64,), 64 * 3 * 3),
        "lin1_w": w_init(ks[6], (256, lin_1 * 64), lin_1 * 64),
        "lin1_b": w_init(ks[7], (256,), lin_1 * 64),
        "lin2_w": w_init(ks[8], (n_actions, 256), 256),
        "lin2_b": w_init(ks[9], (n_actions,), 256),
    }


def prepare_params(params):
    """One-time re-layout of torch-style params into the kernel layout."""
    bf = jnp.bfloat16
    f32 = jnp.float32
    lin_in = params["lin1_w"].shape[1]
    R3 = lin_in // 64
    n_actions = params["lin2_w"].shape[0]

    # conv1 weight -> block-diagonal (128, 64): parity-0 patch feeds channels
    # 0..31 (ow even), parity-1 patch feeds channels 32..63 (ow odd).
    w1_base = params["conv1_w"].reshape(32, 64).T                        # (i*8+j, 32)
    w1 = jnp.zeros((128, 64), f32)
    w1 = w1.at[:64, :32].set(w1_base).at[64:, 32:].set(w1_base).astype(bf)
    b1 = jnp.concatenate([params["conv1_b"], params["conv1_b"]])
    b1 = b1.reshape(1, 64).astype(f32)

    w2 = params["conv2_w"].transpose(2, 3, 1, 0).reshape(512, 64).astype(bf)
    w3 = params["conv3_w"].transpose(2, 3, 1, 0).reshape(576, 64).astype(bf)
    # permute lin1 columns from torch NCHW-flatten (c*R3 + r) to (r*64 + c)
    wl1 = params["lin1_w"].reshape(256, 64, R3).transpose(0, 2, 1)
    wl1 = wl1.reshape(256, lin_in).T.astype(bf)                          # (lin_in, 256)
    wl2 = params["lin2_w"].T.astype(bf)                                  # (256, A)
    return {
        "w1": w1, "b1": b1,
        "w2": w2, "b2": params["conv2_b"].reshape(1, 64).astype(f32),
        "w3": w3, "b3": params["conv3_b"].reshape(1, 64).astype(f32),
        "wl1": wl1, "bl1": params["lin1_b"].reshape(1, 256).astype(f32),
        "wl2": wl2, "bl2": params["lin2_b"].reshape(1, n_actions).astype(f32),
    }


def dqn_forward(prepped, x):
    n, _, h, w = x.shape
    n_actions = prepped["wl2"].shape[1]
    dims = _dims(h, w)
    p1 = build_conv1_patches(x, dims)
    return _dqn_pallas(p1, prepped, dims, n_actions)


# ----------------------------------------------------------------------------
# pure-JAX references for correctness checks
# ----------------------------------------------------------------------------
def dqn_forward_ref(params, x, use_bf16):
    cast = (lambda a: a.astype(jnp.bfloat16)) if use_bf16 else (lambda a: a)

    def conv(x, w, b, s):
        y = jax.lax.conv_general_dilated(
            cast(x), cast(w), (s, s), "VALID",
            dimension_numbers=("NCHW", "OIHW", "NCHW"),
            preferred_element_type=jnp.float32)
        return jnp.maximum(y + b[None, :, None, None], 0.0)

    x = conv(x, params["conv1_w"], params["conv1_b"], 4)
    x = conv(x, params["conv2_w"], params["conv2_b"], 2)
    x = conv(x, params["conv3_w"], params["conv3_b"], 1)
    x = x.reshape(x.shape[0], -1)
    x = jnp.maximum(
        jnp.dot(cast(x), cast(params["lin1_w"].T),
                preferred_element_type=jnp.float32) + params["lin1_b"], 0.0)
    return jnp.dot(cast(x), cast(params["lin2_w"].T),
                   preferred_element_type=jnp.float32) + params["lin2_b"]


if __name__ == "__main__":
    batch, h, w, n_actions = 2, 64, 64, 4      # conv stack: 64 -> 15 -> 6 -> 4
    key = jax.random.PRNGKey(0)
    k_params, k_x = jax.random.split(key)

    params = init_params(k_params, h, w, n_actions)
    x = jax.random.normal(k_x, (batch, 1, h, w), jnp.float32)

    prepped = prepare_params(params)
    fwd = jax.jit(dqn_forward)
    out = jax.block_until_ready(fwd(prepped, x))

    assert out.shape == (batch, n_actions)
    ref_bf16 = dqn_forward_ref(params, x, use_bf16=True)    # same bf16 matmul inputs
    ref_f32 = dqn_forward_ref(params, x, use_bf16=False)    # exact torch f32 semantics
    assert jnp.allclose(out, ref_bf16, atol=5e-3, rtol=5e-3), "mismatch vs bf16 reference"
    assert jnp.allclose(out, ref_f32, atol=5e-2, rtol=5e-2), "mismatch vs f32 reference"

    print("KERNEL_OK")
</pallas_src>

<mosaic_0001>
module attributes {stable_mosaic.version = 11 : i64} {
  func.func @_dqn_kernel(%arg0: i32, %arg1: memref<1x128x128xbf16, #tpu.memory_space<vmem>>, %arg2: memref<128x64xbf16, #tpu.memory_space<vmem>>, %arg3: memref<1x64xf32, #tpu.memory_space<vmem>>, %arg4: memref<512x64xbf16, #tpu.memory_space<vmem>>, %arg5: memref<1x64xf32, #tpu.memory_space<vmem>>, %arg6: memref<576x64xbf16, #tpu.memory_space<vmem>>, %arg7: memref<1x64xf32, #tpu.memory_space<vmem>>, %arg8: memref<1024x256xbf16, #tpu.memory_space<vmem>>, %arg9: memref<1x256xf32, #tpu.memory_space<vmem>>, %arg10: memref<256x4xbf16, #tpu.memory_space<vmem>>, %arg11: memref<1x4xf32, #tpu.memory_space<vmem>>, %arg12: memref<1x1x4xf32, #tpu.memory_space<vmem>>, %arg13: memref<128x64xf32, #tpu.memory_space<vmem>>, %arg14: memref<46x64xf32, #tpu.memory_space<vmem>>, %arg15: memref<28x64xf32, #tpu.memory_space<vmem>>, %arg16: memref<1x1024xf32, #tpu.memory_space<vmem>>) attributes {dimension_semantics = [#tpu.dimension_semantics<parallel>], iteration_bounds = array<i64: 2>, scalar_prefetch = 0 : i64, scratch_operands = 4 : i64, tpu.core_type = #tpu.core_type<tc>, window_params = [{transform_indices = @transform_0, window_bounds = array<i64: 1, 128, 128>}, {pipeline_mode = #tpu.pipeline_mode<synchronous>, transform_indices = @transform_1, window_bounds = array<i64: 128, 64>}, {pipeline_mode = #tpu.pipeline_mode<synchronous>, transform_indices = @transform_2, window_bounds = array<i64: 1, 64>}, {pipeline_mode = #tpu.pipeline_mode<synchronous>, transform_indices = @transform_3, window_bounds = array<i64: 512, 64>}, {pipeline_mode = #tpu.pipeline_mode<synchronous>, transform_indices = @transform_4, window_bounds = array<i64: 1, 64>}, {pipeline_mode = #tpu.pipeline_mode<synchronous>, transform_indices = @transform_5, window_bounds = array<i64: 576, 64>}, {pipeline_mode = #tpu.pipeline_mode<synchronous>, transform_indices = @transform_6, window_bounds = array<i64: 1, 64>}, {pipeline_mode = #tpu.pipeline_mode<synchronous>, transform_indices = @transform_7, window_bounds = array<i64: 1024, 256>}, {pipeline_mode = #tpu.pipeline_mode<synchronous>, transform_indices = @transform_8, window_bounds = array<i64: 1, 256>}, {pipeline_mode = #tpu.pipeline_mode<synchronous>, transform_indices = @transform_9, window_bounds = array<i64: 256, 4>}, {pipeline_mode = #tpu.pipeline_mode<synchronous>, transform_indices = @transform_10, window_bounds = array<i64: 1, 4>}, {transform_indices = @transform_11, window_bounds = array<i64: 1, 1, 4>}]} {
    %c0 = arith.constant 0 : index
    %c0_0 = arith.constant 0 : index
    %c0_1 = arith.constant 0 : index
    %0 = vector.load %arg1[%c0, %c0_0, %c0_1] : memref<1x128x128xbf16, #tpu.memory_space<vmem>>, vector<1x128x128xbf16>
    %1 = vector.shape_cast %0 : vector<1x128x128xbf16> to vector<128x128xbf16>
    %c0_2 = arith.constant 0 : index
    %c0_3 = arith.constant 0 : index
    %2 = vector.load %arg2[%c0_2, %c0_3] : memref<128x64xbf16, #tpu.memory_space<vmem>>, vector<128x64xbf16>
    %cst = arith.constant dense<0.000000e+00> : vector<128x64xf32>
    %3 = tpu.matmul %1, %2, %cst {dimension_numbers = #tpu.dot_dimension_numbers<[1], [0], [0], [1], [0, 0, 1, 1], [], []>} : vector<128x128xbf16>, vector<128x64xbf16>, vector<128x64xf32> -> vector<128x64xf32>
    %c0_4 = arith.constant 0 : index
    %c0_5 = arith.constant 0 : index
    %4 = vector.load %arg3[%c0_4, %c0_5] : memref<1x64xf32, #tpu.memory_space<vmem>>, vector<1x64xf32>
    %5 = vector.broadcast %4 : vector<1x64xf32> to vector<128x64xf32>
    %6 = arith.addf %3, %5 : vector<128x64xf32>
    %cst_6 = arith.constant 0.000000e+00 : f32
    %7 = vector.broadcast %cst_6 : f32 to vector<128x64xf32>
    %8 = arith.maximumf %6, %7 : vector<128x64xf32>
    %c0_7 = arith.constant 0 : index
    %c0_8 = arith.constant 0 : index
    %9 = vector.load %arg13[%c0_7, %c0_8] : memref<128x64xf32, #tpu.memory_space<vmem>>, vector<128x64xf32>
    tpu.vector_store %arg13[%c0_7, %c0_8], %8 {strides = array<i32>} : memref<128x64xf32, #tpu.memory_space<vmem>>, vector<128x64xf32>,
    %cst_9 = arith.constant 0.000000e+00 : f32
    %10 = vector.broadcast %cst_9 : f32 to vector<46x64xf32>
    %c0_10 = arith.constant 0 : index
    %c0_11 = arith.constant 0 : index
    %11 = vector.load %arg13[%c0_10, %c0_11] : memref<128x64xf32, #tpu.memory_space<vmem>>, vector<46x64xf32>
    %12 = arith.truncf %11 : vector<46x64xf32> to vector<46x64xbf16>
    %c0_12 = arith.constant 0 : index
    %c0_13 = arith.constant 0 : index
    %13 = vector.load %arg4[%c0_12, %c0_13] : memref<512x64xbf16, #tpu.memory_space<vmem>>, vector<64x64xbf16>
    %cst_14 = arith.constant dense<0.000000e+00> : vector<46x64xf32>
    %14 = tpu.matmul %12, %13, %cst_14 {dimension_numbers = #tpu.dot_dimension_numbers<[1], [0], [0], [1], [0, 0, 1, 1], [], []>} : vector<46x64xbf16>, vector<64x64xbf16>, vector<46x64xf32> -> vector<46x64xf32>
    %15 = arith.addf %10, %14 : vector<46x64xf32>
    %c1 = arith.constant 1 : index
    %c0_15 = arith.constant 0 : index
    %16 = vector.load %arg13[%c1, %c0_15] : memref<128x64xf32, #tpu.memory_space<vmem>>, vector<46x64xf32>
    %17 = arith.truncf %16 : vector<46x64xf32> to vector<46x64xbf16>
    %c64 = arith.constant 64 : index
    %c0_16 = arith.constant 0 : index
    %18 = vector.load %arg4[%c64, %c0_16] : memref<512x64xbf16, #tpu.memory_space<vmem>>, vector<64x64xbf16>
    %cst_17 = arith.constant dense<0.000000e+00> : vector<46x64xf32>
    %19 = tpu.matmul %17, %18, %cst_17 {dimension_numbers = #tpu.dot_dimension_numbers<[1], [0], [0], [1], [0, 0, 1, 1], [], []>} : vector<46x64xbf16>, vector<64x64xbf16>, vector<46x64xf32> -> vector<46x64xf32>
    %20 = arith.addf %15, %19 : vector<46x64xf32>
    %c64_18 = arith.constant 64 : index
    %c0_19 = arith.constant 0 : index
    %21 = vector.load %arg13[%c64_18, %c0_19] : memref<128x64xf32, #tpu.memory_space<vmem>>, vector<46x64xf32>
    %22 = arith.truncf %21 : vector<46x64xf32> to vector<46x64xbf16>
    %c128 = arith.constant 128 : index
    %c0_20 = arith.constant 0 : index
    %23 = vector.load %arg4[%c128, %c0_20] : memref<512x64xbf16, #tpu.memory_space<vmem>>, vector<64x64xbf16>
    %cst_21 = arith.constant dense<0.000000e+00> : vector<46x64xf32>
    %24 = tpu.matmul %22, %23, %cst_21 {dimension_numbers = #tpu.dot_dimension_numbers<[1], [0], [0], [1], [0, 0, 1, 1], [], []>} : vector<46x64xbf16>, vector<64x64xbf16>, vector<46x64xf32> -> vector<46x64xf32>
    %25 = arith.addf %20, %24 : vector<46x64xf32>
    %c65 = arith.constant 65 : index
    %c0_22 = arith.constant 0 : index
    %26 = vector.load %arg13[%c65, %c0_22] : memref<128x64xf32, #tpu.memory_space<vmem>>, vector<46x64xf32>
    %27 = arith.truncf %26 : vector<46x64xf32> to vector<46x64xbf16>
    %c192 = arith.constant 192 : index
    %c0_23 = arith.constant 0 : index
    %28 = vector.load %arg4[%c192, %c0_23] : memref<512x64xbf16, #tpu.memory_space<vmem>>, vector<64x64xbf16>
    %cst_24 = arith.constant dense<0.000000e+00> : vector<46x64xf32>
    %29 = tpu.matmul %27, %28, %cst_24 {dimension_numbers = #tpu.dot_dimension_numbers<[1], [0], [0], [1], [0, 0, 1, 1], [], []>} : vector<46x64xbf16>, vector<64x64xbf16>, vector<46x64xf32> -> vector<46x64xf32>
    %30 = arith.addf %25, %29 : vector<46x64xf32>
    %c8 = arith.constant 8 : index
    %c0_25 = arith.constant 0 : index
    %31 = vector.load %arg13[%c8, %c0_25] : memref<128x64xf32, #tpu.memory_space<vmem>>, vector<46x64xf32>
    %32 = arith.truncf %31 : vector<46x64xf32> to vector<46x64xbf16>
    %c256 = arith.constant 256 : index
    %c0_26 = arith.constant 0 : index
    %33 = vector.load %arg4[%c256, %c0_26] : memref<512x64xbf16, #tpu.memory_space<vmem>>, vector<64x64xbf16>
    %cst_27 = arith.constant dense<0.000000e+00> : vector<46x64xf32>
    %34 = tpu.matmul %32, %33, %cst_27 {dimension_numbers = #tpu.dot_dimension_numbers<[1], [0], [0], [1], [0, 0, 1, 1], [], []>} : vector<46x64xbf16>, vector<64x64xbf16>, vector<46x64xf32> -> vector<46x64xf32>
    %35 = arith.addf %30, %34 : vector<46x64xf32>
    %c9 = arith.constant 9 : index
    %c0_28 = arith.constant 0 : index
    %36 = vector.load %arg13[%c9, %c0_28] : memref<128x64xf32, #tpu.memory_space<vmem>>, vector<46x64xf32>
    %37 = arith.truncf %36 : vector<46x64xf32> to vector<46x64xbf16>
    %c320 = arith.constant 320 : index
    %c0_29 = arith.constant 0 : index
    %38 = vector.load %arg4[%c320, %c0_29] : memref<512x64xbf16, #tpu.memory_space<vmem>>, vector<64x64xbf16>
    %cst_30 = arith.constant dense<0.000000e+00> : vector<46x64xf32>
    %39 = tpu.matmul %37, %38, %cst_30 {dimension_numbers = #tpu.dot_dimension_numbers<[1], [0], [0], [1], [0, 0, 1, 1], [], []>} : vector<46x64xbf16>, vector<64x64xbf16>, vector<46x64xf32> -> vector<46x64xf32>
    %40 = arith.addf %35, %39 : vector<46x64xf32>
    %c72 = arith.constant 72 : index
    %c0_31 = arith.constant 0 : index
    %41 = vector.load %arg13[%c72, %c0_31] : memref<128x64xf32, #tpu.memory_space<vmem>>, vector<46x64xf32>
    %42 = arith.truncf %41 : vector<46x64xf32> to vector<46x64xbf16>
    %c384 = arith.constant 384 : index
    %c0_32 = arith.constant 0 : index
    %43 = vector.load %arg4[%c384, %c0_32] : memref<512x64xbf16, #tpu.memory_space<vmem>>, vector<64x64xbf16>
    %cst_33 = arith.constant dense<0.000000e+00> : vector<46x64xf32>
    %44 = tpu.matmul %42, %43, %cst_33 {dimension_numbers = #tpu.dot_dimension_numbers<[1], [0], [0], [1], [0, 0, 1, 1], [], []>} : vector<46x64xbf16>, vector<64x64xbf16>, vector<46x64xf32> -> vector<46x64xf32>
    %45 = arith.addf %40, %44 : vector<46x64xf32>
    %c73 = arith.constant 73 : index
    %c0_34 = arith.constant 0 : index
    %46 = vector.load %arg13[%c73, %c0_34] : memref<128x64xf32, #tpu.memory_space<vmem>>, vector<46x64xf32>
    %47 = arith.truncf %46 : vector<46x64xf32> to vector<46x64xbf16>
    %c448 = arith.constant 448 : index
    %c0_35 = arith.constant 0 : index
    %48 = vector.load %arg4[%c448, %c0_35] : memref<512x64xbf16, #tpu.memory_space<vmem>>, vector<64x64xbf16>
    %cst_36 = arith.constant dense<0.000000e+00> : vector<46x64xf32>
    %49 = tpu.matmul %47, %48, %cst_36 {dimension_numbers = #tpu.dot_dimension_numbers<[1], [0], [0], [1], [0, 0, 1, 1], [], []>} : vector<46x64xbf16>, vector<64x64xbf16>, vector<46x64xf32> -> vector<46x64xf32>
    %50 = arith.addf %45, %49 : vector<46x64xf32>
    %c0_37 = arith.constant 0 : index
    %c0_38 = arith.constant 0 : index
    %51 = vector.load %arg5[%c0_37, %c0_38] : memref<1x64xf32, #tpu.memory_space<vmem>>, vector<1x64xf32>
    %52 = vector.broadcast %51 : vector<1x64xf32> to vector<46x64xf32>
    %53 = arith.addf %50, %52 : vector<46x64xf32>
    %cst_39 = arith.constant 0.000000e+00 : f32
    %54 = vector.broadcast %cst_39 : f32 to vector<46x64xf32>
    %55 = arith.maximumf %53, %54 : vector<46x64xf32>
    %c0_40 = arith.constant 0 : index
    %c0_41 = arith.constant 0 : index
    %56 = vector.load %arg14[%c0_40, %c0_41] : memref<46x64xf32, #tpu.memory_space<vmem>>, vector<46x64xf32>
    tpu.vector_store %arg14[%c0_40, %c0_41], %55 {strides = array<i32>} : memref<46x64xf32, #tpu.memory_space<vmem>>, vector<46x64xf32>,
    %cst_42 = arith.constant 0.000000e+00 : f32
    %57 = vector.broadcast %cst_42 : f32 to vector<28x64xf32>
    %c0_43 = arith.constant 0 : index
    %c0_44 = arith.constant 0 : index
    %58 = vector.load %arg14[%c0_43, %c0_44] : memref<46x64xf32, #tpu.memory_space<vmem>>, vector<28x64xf32>
    %59 = arith.truncf %58 : vector<28x64xf32> to vector<28x64xbf16>
    %c0_45 = arith.constant 0 : index
    %c0_46 = arith.constant 0 : index
    %60 = vector.load %arg6[%c0_45, %c0_46] : memref<576x64xbf16, #tpu.memory_space<vmem>>, vector<64x64xbf16>
    %cst_47 = arith.constant dense<0.000000e+00> : vector<28x64xf32>
    %61 = tpu.matmul %59, %60, %cst_47 {dimension_numbers = #tpu.dot_dimension_numbers<[1], [0], [0], [1], [0, 0, 1, 1], [], []>} : vector<28x64xbf16>, vector<64x64xbf16>, vector<28x64xf32> -> vector<28x64xf32>
    %62 = arith.addf %57, %61 : vector<28x64xf32>
    %c1_48 = arith.constant 1 : index
    %c0_49 = arith.constant 0 : index
    %63 = vector.load %arg14[%c1_48, %c0_49] : memref<46x64xf32, #tpu.memory_space<vmem>>, vector<28x64xf32>
    %64 = arith.truncf %63 : vector<28x64xf32> to vector<28x64xbf16>
    %c64_50 = arith.constant 64 : index
    %c0_51 = arith.constant 0 : index
    %65 = vector.load %arg6[%c64_50, %c0_51] : memref<576x64xbf16, #tpu.memory_space<vmem>>, vector<64x64xbf16>
    %cst_52 = arith.constant dense<0.000000e+00> : vector<28x64xf32>
    %66 = tpu.matmul %64, %65, %cst_52 {dimension_numbers = #tpu.dot_dimension_numbers<[1], [0], [0], [1], [0, 0, 1, 1], [], []>} : vector<28x64xbf16>, vector<64x64xbf16>, vector<28x64xf32> -> vector<28x64xf32>
    %67 = arith.addf %62, %66 : vector<28x64xf32>
    %c2 = arith.constant 2 : index
    %c0_53 = arith.constant 0 : index
    %68 = vector.load %arg14[%c2, %c0_53] : memref<46x64xf32, #tpu.memory_space<vmem>>, vector<28x64xf32>
    %69 = arith.truncf %68 : vector<28x64xf32> to vector<28x64xbf16>
    %c128_54 = arith.constant 128 : index
    %c0_55 = arith.constant 0 : index
    %70 = vector.load %arg6[%c128_54, %c0_55] : memref<576x64xbf16, #tpu.memory_space<vmem>>, vector<64x64xbf16>
    %cst_56 = arith.constant dense<0.000000e+00> : vector<28x64xf32>
    %71 = tpu.matmul %69, %70, %cst_56 {dimension_numbers = #tpu.dot_dimension_numbers<[1], [0], [0], [1], [0, 0, 1, 1], [], []>} : vector<28x64xbf16>, vector<64x64xbf16>, vector<28x64xf32> -> vector<28x64xf32>
    %72 = arith.addf %67, %71 : vector<28x64xf32>
    %c8_57 = arith.constant 8 : index
    %c0_58 = arith.constant 0 : index
    %73 = vector.load %arg14[%c8_57, %c0_58] : memref<46x64xf32, #tpu.memory_space<vmem>>, vector<28x64xf32>
    %74 = arith.truncf %73 : vector<28x64xf32> to vector<28x64xbf16>
    %c192_59 = arith.constant 192 : index
    %c0_60 = arith.constant 0 : index
    %75 = vector.load %arg6[%c192_59, %c0_60] : memref<576x64xbf16, #tpu.memory_space<vmem>>, vector<64x64xbf16>
    %cst_61 = arith.constant dense<0.000000e+00> : vector<28x64xf32>
    %76 = tpu.matmul %74, %75, %cst_61 {dimension_numbers = #tpu.dot_dimension_numbers<[1], [0], [0], [1], [0, 0, 1, 1], [], []>} : vector<28x64xbf16>, vector<64x64xbf16>, vector<28x64xf32> -> vector<28x64xf32>
    %77 = arith.addf %72, %76 : vector<28x64xf32>
    %c9_62 = arith.constant 9 : index
    %c0_63 = arith.constant 0 : index
    %78 = vector.load %arg14[%c9_62, %c0_63] : memref<46x64xf32, #tpu.memory_space<vmem>>, vector<28x64xf32>
    %79 = arith.truncf %78 : vector<28x64xf32> to vector<28x64xbf16>
    %c256_64 = arith.constant 256 : index
    %c0_65 = arith.constant 0 : index
    %80 = vector.load %arg6[%c256_64, %c0_65] : memref<576x64xbf16, #tpu.memory_space<vmem>>, vector<64x64xbf16>
    %cst_66 = arith.constant dense<0.000000e+00> : vector<28x64xf32>
    %81 = tpu.matmul %79, %80, %cst_66 {dimension_numbers = #tpu.dot_dimension_numbers<[1], [0], [0], [1], [0, 0, 1, 1], [], []>} : vector<28x64xbf16>, vector<64x64xbf16>, vector<28x64xf32> -> vector<28x64xf32>
    %82 = arith.addf %77, %81 : vector<28x64xf32>
    %c10 = arith.constant 10 : index
    %c0_67 = arith.constant 0 : index
    %83 = vector.load %arg14[%c10, %c0_67] : memref<46x64xf32, #tpu.memory_space<vmem>>, vector<28x64xf32>
    %84 = arith.truncf %83 : vector<28x64xf32> to vector<28x64xbf16>
    %c320_68 = arith.constant 320 : index
    %c0_69 = arith.constant 0 : index
    %85 = vector.load %arg6[%c320_68, %c0_69] : memref<576x64xbf16, #tpu.memory_space<vmem>>, vector<64x64xbf16>
    %cst_70 = arith.constant dense<0.000000e+00> : vector<28x64xf32>
    %86 = tpu.matmul %84, %85, %cst_70 {dimension_numbers = #tpu.dot_dimension_numbers<[1], [0], [0], [1], [0, 0, 1, 1], [], []>} : vector<28x64xbf16>, vector<64x64xbf16>, vector<28x64xf32> -> vector<28x64xf32>
    %87 = arith.addf %82, %86 : vector<28x64xf32>
    %c16 = arith.constant 16 : index
    %c0_71 = arith.constant 0 : index
    %88 = vector.load %arg14[%c16, %c0_71] : memref<46x64xf32, #tpu.memory_space<vmem>>, vector<28x64xf32>
    %89 = arith.truncf %88 : vector<28x64xf32> to vector<28x64xbf16>
    %c384_72 = arith.constant 384 : index
    %c0_73 = arith.constant 0 : index
    %90 = vector.load %arg6[%c384_72, %c0_73] : memref<576x64xbf16, #tpu.memory_space<vmem>>, vector<64x64xbf16>
    %cst_74 = arith.constant dense<0.000000e+00> : vector<28x64xf32>
    %91 = tpu.matmul %89, %90, %cst_74 {dimension_numbers = #tpu.dot_dimension_numbers<[1], [0], [0], [1], [0, 0, 1, 1], [], []>} : vector<28x64xbf16>, vector<64x64xbf16>, vector<28x64xf32> -> vector<28x64xf32>
    %92 = arith.addf %87, %91 : vector<28x64xf32>
    %c17 = arith.constant 17 : index
    %c0_75 = arith.constant 0 : index
    %93 = vector.load %arg14[%c17, %c0_75] : memref<46x64xf32, #tpu.memory_space<vmem>>, vector<28x64xf32>
    %94 = arith.truncf %93 : vector<28x64xf32> to vector<28x64xbf16>
    %c448_76 = arith.constant 448 : index
    %c0_77 = arith.constant 0 : index
    %95 = vector.load %arg6[%c448_76, %c0_77] : memref<576x64xbf16, #tpu.memory_space<vmem>>, vector<64x64xbf16>
    %cst_78 = arith.constant dense<0.000000e+00> : vector<28x64xf32>
    %96 = tpu.matmul %94, %95, %cst_78 {dimension_numbers = #tpu.dot_dimension_numbers<[1], [0], [0], [1], [0, 0, 1, 1], [], []>} : vector<28x64xbf16>, vector<64x64xbf16>, vector<28x64xf32> -> vector<28x64xf32>
    %97 = arith.addf %92, %96 : vector<28x64xf32>
    %c18 = arith.constant 18 : index
    %c0_79 = arith.constant 0 : index
    %98 = vector.load %arg14[%c18, %c0_79] : memref<46x64xf32, #tpu.memory_space<vmem>>, vector<28x64xf32>
    %99 = arith.truncf %98 : vector<28x64xf32> to vector<28x64xbf16>
    %c512 = arith.constant 512 : index
    %c0_80 = arith.constant 0 : index
    %100 = vector.load %arg6[%c512, %c0_80] : memref<576x64xbf16, #tpu.memory_space<vmem>>, vector<64x64xbf16>
    %cst_81 = arith.constant dense<0.000000e+00> : vector<28x64xf32>
    %101 = tpu.matmul %99, %100, %cst_81 {dimension_numbers = #tpu.dot_dimension_numbers<[1], [0], [0], [1], [0, 0, 1, 1], [], []>} : vector<28x64xbf16>, vector<64x64xbf16>, vector<28x64xf32> -> vector<28x64xf32>
    %102 = arith.addf %97, %101 : vector<28x64xf32>
    %c0_82 = arith.constant 0 : index
    %c0_83 = arith.constant 0 : index
    %103 = vector.load %arg7[%c0_82, %c0_83] : memref<1x64xf32, #tpu.memory_space<vmem>>, vector<1x64xf32>
    %104 = vector.broadcast %103 : vector<1x64xf32> to vector<28x64xf32>
    %105 = arith.addf %102, %104 : vector<28x64xf32>
    %cst_84 = arith.constant 0.000000e+00 : f32
    %106 = vector.broadcast %cst_84 : f32 to vector<28x64xf32>
    %107 = arith.maximumf %105, %106 : vector<28x64xf32>
    %c0_85 = arith.constant 0 : index
    %c0_86 = arith.constant 0 : index
    %108 = vector.load %arg15[%c0_85, %c0_86] : memref<28x64xf32, #tpu.memory_space<vmem>>, vector<28x64xf32>
    tpu.vector_store %arg15[%c0_85, %c0_86], %107 {strides = array<i32>} : memref<28x64xf32, #tpu.memory_space<vmem>>, vector<28x64xf32>,
    %c0_87 = arith.constant 0 : index
    %c0_88 = arith.constant 0 : index
    %109 = vector.load %arg15[%c0_87, %c0_88] : memref<28x64xf32, #tpu.memory_space<vmem>>, vector<1x64xf32>
    %c0_89 = arith.constant 0 : index
    %c0_90 = arith.constant 0 : index
    %110 = vector.load %arg16[%c0_89, %c0_90] : memref<1x1024xf32, #tpu.memory_space<vmem>>, vector<1x64xf32>
    tpu.vector_store %arg16[%c0_89, %c0_90], %109 {strides = array<i32>} : memref<1x1024xf32, #tpu.memory_space<vmem>>, vector<1x64xf32>,
    %c1_91 = arith.constant 1 : index
    %c0_92 = arith.constant 0 : index
    %111 = vector.load %arg15[%c1_91, %c0_92] : memref<28x64xf32, #tpu.memory_space<vmem>>, vector<1x64xf32>
    %c0_93 = arith.constant 0 : index
    %c64_94 = arith.constant 64 : index
    %112 = vector.load %arg16[%c0_93, %c64_94] : memref<1x1024xf32, #tpu.memory_space<vmem>>, vector<1x64xf32>
    tpu.vector_store %arg16[%c0_93, %c64_94], %111 {strides = array<i32>} : memref<1x1024xf32, #tpu.memory_space<vmem>>, vector<1x64xf32>,
    %c2_95 = arith.constant 2 : index
    %c0_96 = arith.constant 0 : index
    %113 = vector.load %arg15[%c2_95, %c0_96] : memref<28x64xf32, #tpu.memory_space<vmem>>, vector<1x64xf32>
    %c0_97 = arith.constant 0 : index
    %c128_98 = arith.constant 128 : index
    %114 = vector.load %arg16[%c0_97, %c128_98] : memref<1x1024xf32, #tpu.memory_space<vmem>>, vector<1x64xf32>
    tpu.vector_store %arg16[%c0_97, %c128_98], %113 {strides = array<i32>} : memref<1x1024xf32, #tpu.memory_space<vmem>>, vector<1x64xf32>,
    %c3 = arith.constant 3 : index
    %c0_99 = arith.constant 0 : index
    %115 = vector.load %arg15[%c3, %c0_99] : memref<28x64xf32, #tpu.memory_space<vmem>>, vector<1x64xf32>
    %c0_100 = arith.constant 0 : index
    %c192_101 = arith.constant 192 : index
    %116 = vector.load %arg16[%c0_100, %c192_101] : memref<1x1024xf32, #tpu.memory_space<vmem>>, vector<1x64xf32>
    tpu.vector_store %arg16[%c0_100, %c192_101], %115 {strides = array<i32>} : memref<1x1024xf32, #tpu.memory_space<vmem>>, vector<1x64xf32>,
    %c8_102 = arith.constant 8 : index
    %c0_103 = arith.constant 0 : index
    %117 = vector.load %arg15[%c8_102, %c0_103] : memref<28x64xf32, #tpu.memory_space<vmem>>, vector<1x64xf32>
    %c0_104 = arith.constant 0 : index
    %c256_105 = arith.constant 256 : index
    %118 = vector.load %arg16[%c0_104, %c256_105] : memref<1x1024xf32, #tpu.memory_space<vmem>>, vector<1x64xf32>
    tpu.vector_store %arg16[%c0_104, %c256_105], %117 {strides = array<i32>} : memref<1x1024xf32, #tpu.memory_space<vmem>>, vector<1x64xf32>,
    %c9_106 = arith.constant 9 : index
    %c0_107 = arith.constant 0 : index
    %119 = vector.load %arg15[%c9_106, %c0_107] : memref<28x64xf32, #tpu.memory_space<vmem>>, vector<1x64xf32>
    %c0_108 = arith.constant 0 : index
    %c320_109 = arith.constant 320 : index
    %120 = vector.load %arg16[%c0_108, %c320_109] : memref<1x1024xf32, #tpu.memory_space<vmem>>, vector<1x64xf32>
    tpu.vector_store %arg16[%c0_108, %c320_109], %119 {strides = array<i32>} : memref<1x1024xf32, #tpu.memory_space<vmem>>, vector<1x64xf32>,
    %c10_110 = arith.constant 10 : index
    %c0_111 = arith.constant 0 : index
    %121 = vector.load %arg15[%c10_110, %c0_111] : memref<28x64xf32, #tpu.memory_space<vmem>>, vector<1x64xf32>
    %c0_112 = arith.constant 0 : index
    %c384_113 = arith.constant 384 : index
    %122 = vector.load %arg16[%c0_112, %c384_113] : memref<1x1024xf32, #tpu.memory_space<vmem>>, vector<1x64xf32>
    tpu.vector_store %arg16[%c0_112, %c384_113], %121 {strides = array<i32>} : memref<1x1024xf32, #tpu.memory_space<vmem>>, vector<1x64xf32>,
    %c11 = arith.constant 11 : index
    %c0_114 = arith.constant 0 : index
    %123 = vector.load %arg15[%c11, %c0_114] : memref<28x64xf32, #tpu.memory_space<vmem>>, vector<1x64xf32>
    %c0_115 = arith.constant 0 : index
    %c448_116 = arith.constant 448 : index
    %124 = vector.load %arg16[%c0_115, %c448_116] : memref<1x1024xf32, #tpu.memory_space<vmem>>, vector<1x64xf32>
    tpu.vector_store %arg16[%c0_115, %c448_116], %123 {strides = array<i32>} : memref<1x1024xf32, #tpu.memory_space<vmem>>, vector<1x64xf32>,
    %c16_117 = arith.constant 16 : index
    %c0_118 = arith.constant 0 : index
    %125 = vector.load %arg15[%c16_117, %c0_118] : memref<28x64xf32, #tpu.memory_space<vmem>>, vector<1x64xf32>
    %c0_119 = arith.constant 0 : index
    %c512_120 = arith.constant 512 : index
    %126 = vector.load %arg16[%c0_119, %c512_120] : memref<1x1024xf32, #tpu.memory_space<vmem>>, vector<1x64xf32>
    tpu.vector_store %arg16[%c0_119, %c512_120], %125 {strides = array<i32>} : memref<1x1024xf32, #tpu.memory_space<vmem>>, vector<1x64xf32>,
    %c17_121 = arith.constant 17 : index
    %c0_122 = arith.constant 0 : index
    %127 = vector.load %arg15[%c17_121, %c0_122] : memref<28x64xf32, #tpu.memory_space<vmem>>, vector<1x64xf32>
    %c0_123 = arith.constant 0 : index
    %c576 = arith.constant 576 : index
    %128 = vector.load %arg16[%c0_123, %c576] : memref<1x1024xf32, #tpu.memory_space<vmem>>, vector<1x64xf32>
    tpu.vector_store %arg16[%c0_123, %c576], %127 {strides = array<i32>} : memref<1x1024xf32, #tpu.memory_space<vmem>>, vector<1x64xf32>,
    %c18_124 = arith.constant 18 : index
    %c0_125 = arith.constant 0 : index
    %129 = vector.load %arg15[%c18_124, %c0_125] : memref<28x64xf32, #tpu.memory_space<vmem>>, vector<1x64xf32>
    %c0_126 = arith.constant 0 : index
    %c640 = arith.constant 640 : index
    %130 = vector.load %arg16[%c0_126, %c640] : memref<1x1024xf32, #tpu.memory_space<vmem>>, vector<1x64xf32>
    tpu.vector_store %arg16[%c0_126, %c640], %129 {strides = array<i32>} : memref<1x1024xf32, #tpu.memory_space<vmem>>, vector<1x64xf32>,
    %c19 = arith.constant 19 : index
    %c0_127 = arith.constant 0 : index
    %131 = vector.load %arg15[%c19, %c0_127] : memref<28x64xf32, #tpu.memory_space<vmem>>, vector<1x64xf32>
    %c0_128 = arith.constant 0 : index
    %c704 = arith.constant 704 : index
    %132 = vector.load %arg16[%c0_128, %c704] : memref<1x1024xf32, #tpu.memory_space<vmem>>, vector<1x64xf32>
    tpu.vector_store %arg16[%c0_128, %c704], %131 {strides = array<i32>} : memref<1x1024xf32, #tpu.memory_space<vmem>>, vector<1x64xf32>,
    %c24 = arith.constant 24 : index
    %c0_129 = arith.constant 0 : index
    %133 = vector.load %arg15[%c24, %c0_129] : memref<28x64xf32, #tpu.memory_space<vmem>>, vector<1x64xf32>
    %c0_130 = arith.constant 0 : index
    %c768 = arith.constant 768 : index
    %134 = vector.load %arg16[%c0_130, %c768] : memref<1x1024xf32, #tpu.memory_space<vmem>>, vector<1x64xf32>
    tpu.vector_store %arg16[%c0_130, %c768], %133 {strides = array<i32>} : memref<1x1024xf32, #tpu.memory_space<vmem>>, vector<1x64xf32>,
    %c25 = arith.constant 25 : index
    %c0_131 = arith.constant 0 : index
    %135 = vector.load %arg15[%c25, %c0_131] : memref<28x64xf32, #tpu.memory_space<vmem>>, vector<1x64xf32>
    %c0_132 = arith.constant 0 : index
    %c832 = arith.constant 832 : index
    %136 = vector.load %arg16[%c0_132, %c832] : memref<1x1024xf32, #tpu.memory_space<vmem>>, vector<1x64xf32>
    tpu.vector_store %arg16[%c0_132, %c832], %135 {strides = array<i32>} : memref<1x1024xf32, #tpu.memory_space<vmem>>, vector<1x64xf32>,
    %c26 = arith.constant 26 : index
    %c0_133 = arith.constant 0 : index
    %137 = vector.load %arg15[%c26, %c0_133] : memref<28x64xf32, #tpu.memory_space<vmem>>, vector<1x64xf32>
    %c0_134 = arith.constant 0 : index
    %c896 = arith.constant 896 : index
    %138 = vector.load %arg16[%c0_134, %c896] : memref<1x1024xf32, #tpu.memory_space<vmem>>, vector<1x64xf32>
    tpu.vector_store %arg16[%c0_134, %c896], %137 {strides = array<i32>} : memref<1x1024xf32, #tpu.memory_space<vmem>>, vector<1x64xf32>,
    %c27 = arith.constant 27 : index
    %c0_135 = arith.constant 0 : index
    %139 = vector.load %arg15[%c27, %c0_135] : memref<28x64xf32, #tpu.memory_space<vmem>>, vector<1x64xf32>
    %c0_136 = arith.constant 0 : index
    %c960 = arith.constant 960 : index
    %140 = vector.load %arg16[%c0_136, %c960] : memref<1x1024xf32, #tpu.memory_space<vmem>>, vector<1x64xf32>
    tpu.vector_store %arg16[%c0_136, %c960], %139 {strides = array<i32>} : memref<1x1024xf32, #tpu.memory_space<vmem>>, vector<1x64xf32>,
    %c0_137 = arith.constant 0 : index
    %c0_138 = arith.constant 0 : index
    %141 = vector.load %arg16[%c0_137, %c0_138] : memref<1x1024xf32, #tpu.memory_space<vmem>>, vector<1x1024xf32>
    %142 = arith.truncf %141 : vector<1x1024xf32> to vector<1x1024xbf16>
    %c0_139 = arith.constant 0 : index
    %c0_140 = arith.constant 0 : index
    %143 = vector.load %arg8[%c0_139, %c0_140] : memref<1024x256xbf16, #tpu.memory_space<vmem>>, vector<1024x256xbf16>
    %cst_141 = arith.constant dense<0.000000e+00> : vector<1x256xf32>
    %144 = tpu.matmul %142, %143, %cst_141 {dimension_numbers = #tpu.dot_dimension_numbers<[1], [0], [0], [1], [0, 0, 1, 1], [], []>} : vector<1x1024xbf16>, vector<1024x256xbf16>, vector<1x256xf32> -> vector<1x256xf32>
    %c0_142 = arith.constant 0 : index
    %c0_143 = arith.constant 0 : index
    %145 = vector.load %arg9[%c0_142, %c0_143] : memref<1x256xf32, #tpu.memory_space<vmem>>, vector<1x256xf32>
    %146 = arith.addf %144, %145 : vector<1x256xf32>
    %cst_144 = arith.constant 0.000000e+00 : f32
    %147 = vector.broadcast %cst_144 : f32 to vector<1x256xf32>
    %148 = arith.maximumf %146, %147 : vector<1x256xf32>
    %149 = arith.truncf %148 : vector<1x256xf32> to vector<1x256xbf16>
    %c0_145 = arith.constant 0 : index
    %c0_146 = arith.constant 0 : index
    %150 = vector.load %arg10[%c0_145, %c0_146] : memref<256x4xbf16, #tpu.memory_space<vmem>>, vector<256x4xbf16>
    %cst_147 = arith.constant dense<0.000000e+00> : vector<1x4xf32>
    %151 = tpu.matmul %149, %150, %cst_147 {dimension_numbers = #tpu.dot_dimension_numbers<[1], [0], [0], [1], [0, 0, 1, 1], [], []>} : vector<1x256xbf16>, vector<256x4xbf16>, vector<1x4xf32> -> vector<1x4xf32>
    %c0_148 = arith.constant 0 : index
    %c0_149 = arith.constant 0 : index
    %152 = vector.load %arg11[%c0_148, %c0_149] : memref<1x4xf32, #tpu.memory_space<vmem>>, vector<1x4xf32>
    %153 = arith.addf %151, %152 : vector<1x4xf32>
    %c0_150 = arith.constant 0 : index
    %c0_151 = arith.constant 0 : index
    %c0_152 = arith.constant 0 : index
    %154 = vector.load %arg12[%c0_150, %c0_151, %c0_152] : memref<1x1x4xf32, #tpu.memory_space<vmem>>, vector<1x1x4xf32>
    %155 = vector.shape_cast %154 : vector<1x1x4xf32> to vector<1x4xf32>
    %156 = vector.shape_cast %153 : vector<1x4xf32> to vector<1x1x4xf32>
    tpu.vector_store %arg12[%c0_150, %c0_151, %c0_152], %156 {strides = array<i32>} : memref<1x1x4xf32, #tpu.memory_space<vmem>>, vector<1x1x4xf32>,
    return
  }
  func.func @transform_0(%arg0: i32) -> (i32, i32, i32) {
    %c0_i32 = arith.constant 0 : i32
    %c0_i32_0 = arith.constant 0 : i32
    %c0_i32_1 = arith.constant 0 : i32
    return %arg0, %c0_i32, %c0_i32_0 : i32, i32, i32
  }
  func.func @transform_1(%arg0: i32) -> (i32, i32) {
    %c0_i32 = arith.constant 0 : i32
    %c0_i32_0 = arith.constant 0 : i32
    %c0_i32_1 = arith.constant 0 : i32
    return %c0_i32, %c0_i32_0 : i32, i32
  }
  func.func @transform_2(%arg0: i32) -> (i32, i32) {
    %c0_i32 = arith.constant 0 : i32
    %c0_i32_0 = arith.constant 0 : i32
    %c0_i32_1 = arith.constant 0 : i32
    return %c0_i32, %c0_i32_0 : i32, i32
  }
  func.func @transform_3(%arg0: i32) -> (i32, i32) {
    %c0_i32 = arith.constant 0 : i32
    %c0_i32_0 = arith.constant 0 : i32
    %c0_i32_1 = arith.constant 0 : i32
    return %c0_i32, %c0_i32_0 : i32, i32
  }
  func.func @transform_4(%arg0: i32) -> (i32, i32) {
    %c0_i32 = arith.constant 0 : i32
    %c0_i32_0 = arith.constant 0 : i32
    %c0_i32_1 = arith.constant 0 : i32
    return %c0_i32, %c0_i32_0 : i32, i32
  }
  func.func @transform_5(%arg0: i32) -> (i32, i32) {
    %c0_i32 = arith.constant 0 : i32
    %c0_i32_0 = arith.constant 0 : i32
    %c0_i32_1 = arith.constant 0 : i32
    return %c0_i32, %c0_i32_0 : i32, i32
  }
  func.func @transform_6(%arg0: i32) -> (i32, i32) {
    %c0_i32 = arith.constant 0 : i32
    %c0_i32_0 = arith.constant 0 : i32
    %c0_i32_1 = arith.constant 0 : i32
    return %c0_i32, %c0_i32_0 : i32, i32
  }
  func.func @transform_7(%arg0: i32) -> (i32, i32) {
    %c0_i32 = arith.constant 0 : i32
    %c0_i32_0 = arith.constant 0 : i32
    %c0_i32_1 = arith.constant 0 : i32
    return %c0_i32, %c0_i32_0 : i32, i32
  }
  func.func @transform_8(%arg0: i32) -> (i32, i32) {
    %c0_i32 = arith.constant 0 : i32
    %c0_i32_0 = arith.constant 0 : i32
    %c0_i32_1 = arith.constant 0 : i32
    return %c0_i32, %c0_i32_0 : i32, i32
  }
  func.func @transform_9(%arg0: i32) -> (i32, i32) {
    %c0_i32 = arith.constant 0 : i32
    %c0_i32_0 = arith.constant 0 : i32
    %c0_i32_1 = arith.constant 0 : i32
    return %c0_i32, %c0_i32_0 : i32, i32
  }
  func.func @transform_10(%arg0: i32) -> (i32, i32) {
    %c0_i32 = arith.constant 0 : i32
    %c0_i32_0 = arith.constant 0 : i32
    %c0_i32_1 = arith.constant 0 : i32
    return %c0_i32, %c0_i32_0 : i32, i32
  }
  func.func @transform_11(%arg0: i32) -> (i32, i32, i32) {
    %c0_i32 = arith.constant 0 : i32
    %c0_i32_0 = arith.constant 0 : i32
    %c0_i32_1 = arith.constant 0 : i32
    return %arg0, %c0_i32, %c0_i32_0 : i32, i32, i32
  }
}

</mosaic_0001>

<bundles_post_ra>
// kernel: dqn_forward.1
= control target key start
LH: loop header
LB: loop body
LE: loop exit
PB: predicated region body
PF: predicated region fallthrough
CT: control target
= control target key end

     0   :  { %s6266_s0 = inlined_call_operand.vmem [shape: bf16[2,128,128], index: 0, kind: input, shape index: {}]   ;;  %s6267_s1 = inlined_call_operand.vmem [shape: bf16[128,64], index: 1, kind: input, shape index: {}]   ;;  %s6268_s2 = inlined_call_operand.vmem [shape: f32[1,64], index: 2, kind: input, shape index: {}]   ;;  %s6269_s3 = inlined_call_operand.vmem [shape: bf16[512,64], index: 3, kind: input, shape index: {}]   ;;  %s6270_s4 = inlined_call_operand.vmem [shape: f32[1,64], index: 4, kind: input, shape index: {}]   ;;  %s6271_s5 = inlined_call_operand.vmem [shape: bf16[576,64], index: 5, kind: input, shape index: {}]   ;;  %s6272_s6 = inlined_call_operand.vmem [shape: f32[1,64], index: 6, kind: input, shape index: {}]   ;;  %s6273_s7 = inlined_call_operand.vmem [shape: bf16[1024,256], index: 7, kind: input, shape index: {}]   ;;  %s6274_s8 = inlined_call_operand.vmem [shape: f32[1,256], index: 8, kind: input, shape index: {}]   ;;  %s6275_s9 = inlined_call_operand.vmem [shape: bf16[256,4], index: 9, kind: input, shape index: {}]   ;;  %s6276_s10 = inlined_call_operand.vmem [shape: f32[1,4], index: 10, kind: input, shape index: {}]   ;;  %s6277_s11 = inlined_call_operand.hbm [shape: f32[2,1,4], index: 11, kind: output, shape index: {}]  }
   0x1   :  { %6278 = sst [smem:[#allocation9_spill]] %s6266_s0 }
   0x2   :  { %16 = vsyncpa [#allocation7], 0 }
   0x3   :  { %18 = vsyncpa [#allocation7 + $0x1], 0  ;;  %s5130_s17 = smov 0   ;;  %s5132_s18 = smov 0  }
   0x4   :  { %s5134_s19 = smov 0   ;;  %s5136_s20 = smov 0  }
   0x5 LB: > { %s5151_s21 = sadd.s32 4294967295, %s5063_s20   ;;  %s3873_s22 = sadd.s32 4294967294, %s5063_s20   ;;  %s5063_s20 = sphi %s5136_s20, %s6289_s20   ;;  %s5059_s19 = sphi %s5134_s19, %s6288_s19   ;;  %s5055_s18 = sphi %s5132_s18, %s6287_s18   ;;  %s5051_s17 = sphi %s5130_s17, %s6286_s17  }
   0x6   : > { %s5155_s23 = sadd.s32 1, %s5063_s20   ;;  %s267_s24 = sadd.s32 1, %s5059_s19 }
   0x7   : > { %s264_s25 = ssub.s32 %s5063_s20, %s5155_s23  ;;  %p277_p0 = scmp.ne.s32.totalorder %s5059_s19, %s5055_s18 }
   0x8   : > { %p265_p1 = scmp.eq.s32.totalorder %s264_s25, 0  ;;  %p278_p2 = scmp.eq.s32.totalorder %s5151_s21, 1 }
   0x9   : > { %p283_p3 = scmp.ne.s32.totalorder %s5055_s18, %s5051_s17  ;;  %p284_p4 = scmp.eq.s32.totalorder %s3873_s22, 1 }
   0xa   : > { %s5166_s26 = scalar_select %p265_p1, %s5059_s19, %s267_s24  }
   0xb   : > { %p5168_p5 = por %p278_p2, %p277_p0  ;;  %p5172_p6 = por %p284_p4, %p283_p3 }
   0xc   : > { %p3876_p7 = scmp.ge.s32.totalorder %s5063_s20, 1  ;;  %p340_p8 = scmp.lt.s32.totalorder %s5063_s20, 3 }
   0xe   : > { %p341_p9 = pnand %p3876_p7, %p340_p8 }
   0xf   : > { %v4709_v0 = vld [vmem:[%s6267_s1] sm:$0xff] (!%p341_p9)   ;;  %p379_p10 = scmp.lt.s32.totalorder (!%p341_p9), %s5151_s21, 1  ;;  %v4710_v1 = vld [vmem:[%s6267_s1 + $0x8] sm:$0xff] (!%p341_p9)   ;;  %v5065_v2 = vmov (!%p341_p9), 0.0   ;;  %v4711_v3 = vld [vmem:[%s6267_s1 + $0x10] sm:$0xff] (!%p341_p9)   ;;  %s6281_s0 = sld [smem:[#allocation9_spill]] (!%p341_p9) }
  0x10   : > { %344 = sbr.rel (%p341_p9) target bundleno = 1743 (0x6cf), region = 64  ;;  %4312 = vmatprep.subr.bf16.mxu0 (!%p341_p9), %v4709_v0  ;;  %4612 = vmatprep.subr.bf16.mxu1 (!%p341_p9), %v5065_v2  ;;  %v4712_v4 = vld [vmem:[%s6267_s1 + $0x18] sm:$0xff] (!%p341_p9)   ;;  %v4713_v6 = vld [vmem:[%s6267_s1 + $0x20] sm:$0xff] (!%p341_p9)   ;;  %v4714_v7 = vld [vmem:[%s6267_s1 + $0x28] sm:$0xff] (!%p341_p9)   ;;  %vm5066_vm0 = vmmov (!%p341_p9), 0   ;;  %vm633_vm1 = vcmask (!%p341_p9), 523264  }
  0x11   : > { %4313 = vmatpush3.bf16.msra.mxu0 (!%p341_p9), %v4709_v0  ;;  %v4715_v8 = vld [vmem:[%s6267_s1 + $0x30] sm:$0xff] (!%p341_p9)   ;;  %v4716_v9 = vld [vmem:[%s6267_s1 + $0x38] sm:$0xff] (!%p341_p9)   ;;  %v4725_v12 = vld [vmem:[%s6269_s3 + $0x20] sm:$0xff] (!%p341_p9)   ;;  %4376 = vmatprep.mubr.msk.bf16.mxu1 (!%p341_p9), %vm5066_vm0, %v5065_v2  ;;  %vm1566_vm2 = vcmask (!%p341_p9), 521216   ;;  %vm2451_vm3 = vcmask (!%p341_p9), 519168   ;;  %s5068_s16 = smov (!%p341_p9), 64  }
  0x12   : > { %4314 = vmatprep.subr.bf16.mxu0 (!%p341_p9), %v4710_v1  ;;  %v4726_v13 = vld [vmem:[%s6269_s3 + $0x28] sm:$0xff] (!%p341_p9)   ;;  %v5230_v19 = vld [vmem:[%s6269_s3] sm:$0xff] (!%p341_p9)   ;;  %v4728_v21 = vld [vmem:[%s6269_s3 + $0x30] sm:$0xff] (!%p341_p9)   ;;  %s377_s15 = sand.u32 (!%p341_p9), 1, %s5055_s18   ;;  %s4160_s25 = sshll.u32 (!%p341_p9), %s5151_s21, 4  ;;  %vm3803_vm8 = vcmask (!%p341_p9), 24576  }
  0x13   : > { %4616 = vmatpush3.bf16.msra.mxu1 (!%p341_p9), %v5230_v19  ;;  %v5237_v20 = vld [vmem:[%s6269_s3 + $0x8] sm:$0xff] (!%p341_p9)   ;;  %v5247_v22 = vld [vmem:[%s6269_s3 + $0x10] sm:$0xff] (!%p341_p9)   ;;  %v5255_v23 = vld [vmem:[%s6269_s3 + $0x18] sm:$0xff] (!%p341_p9)   ;;  %s6224_s13 = scalar_lea.hbm (!%p341_p9), %s6277_s11, %s4160_s25 }
  0x14   : > { %4613 = vmatprep.subr.bf16.mxu1 (!%p341_p9), %v5065_v2  ;;  %v4731_v24 = vld [vmem:[%s6269_s3 + $0x38] sm:$0xff] (!%p341_p9)   ;;  %v5270_v25 = vld [vmem:[%s6268_s2] ss:$0 sm:$0xff] (!%p341_p9)  ;;  %v4734_v60 = vld [vmem:[%s6269_s3 + $0x68] sm:$0xff] (!%p341_p9)  }
  0x15   : > { %4315 = vmatpush3.bf16.msra.mxu0 (!%p341_p9), %v4710_v1  ;;  %v4733_v50 = vld [vmem:[%s6269_s3 + $0x60] sm:$0xff] (!%p341_p9)  }
  0x16   : > { %4316 = vmatprep.subr.bf16.mxu0 (!%p341_p9), %v4711_v3 }
  0x17   : > { %s380_s14 = scalar_select %p379_p10, %s5151_s21, 1  ;;  %4617 = vmatpush3.bf16.msra.mxu1 %v5237_v20 }
  0x18   : > { %4614 = vmatprep.subr.bf16.mxu1 %v5065_v2 }
  0x19   : > { %s4163_s22 = sshll.u32 %s380_s14, 6  ;;  %4317 = vmatpush3.bf16.msra.mxu0 %v4711_v3  ;;  %s3806_s14 = scalar_lea.sflag [#allocation7], %s377_s15 }
  0x1a   : > { %s5193_s29 = scalar_lea.vmem %s6281_s0, %s4163_s22  ;;  %4318 = vmatprep.subr.bf16.mxu0 %v4712_v4  ;;  %s5069_s22 = smov [#allocation6]  }
  0x1b   : > { %v4717_v5 = vld [vmem:[%s5193_s29] sm:$0xff]   ;;  %v4718_v10 = vld [vmem:[%s5193_s29 + $0x8] sm:$0xff]   ;;  %v4719_v11 = vld [vmem:[%s5193_s29 + $0x10] sm:$0xff]   ;;  %4618 = vmatpush3.bf16.msra.mxu1 %v5247_v22  ;;  %s5005_s24 = sshll.u32 %s5069_s22, 4  ;;  %s5006_s24 = int_to_ptr.vmem [resolvable:$false] %s5005_s24 }
  0x1c   : > { %4328 = vmatprep.mubr.bf16.mxu0 %v4717_v5  ;;  %v4720_v14 = vld [vmem:[%s5193_s29 + $0x18] sm:$0xff]   ;;  %v4721_v15 = vld [vmem:[%s5193_s29 + $0x20] sm:$0xff]   ;;  %v4722_v16 = vld [vmem:[%s5193_s29 + $0x28] sm:$0xff]   ;;  %4615 = vmatprep.subr.bf16.mxu1 %v5065_v2  ;;  %s5007_s0 = scalar_lea.vmem %s5006_s24, 32 }
  0x1d   : > { %4319 = vmatpush3.bf16.msra.mxu0 %v4712_v4  ;;  %v4723_v17 = vld [vmem:[%s5193_s29 + $0x30] sm:$0xff]   ;;  %v4724_v18 = vld [vmem:[%s5193_s29 + $0x38] sm:$0xff]   ;;  %s378_s29 = scalar_lea.vmem [#allocation6], %s377_s15 }
  0x1e   : > { %4320 = vmatprep.subr.bf16.mxu0 %v4713_v6  ;;  %s3818_s30 = sshll.u32 %s378_s29, 4  ;;  %s6226_s30 = int_to_ptr.vmem [resolvable:$true] %s3818_s30 }
  0x1f   : > { %4619 = vmatpush3.bf16.msra.mxu1 %v5255_v23  ;;  %s5001_s21 = scalar_lea.vmem %s6226_s30, 16  ;;  %p5008_p0 = scmp.lt.s32.totalorder %s6226_s30, %s5006_s24 }
  0x20   : > { %4404 = vmatprep.subr.bf16.mxu1 %v5065_v2  ;;  %p5002_p11 = scmp.ne.s32.totalorder %s6226_s30, %s5001_s21  ;;  %p5009_p1 = scmp.lt.s32.totalorder %s5007_s0, %s5001_s21 }
  0x21   : > { %4321 = vmatpush3.bf16.msra.mxu0 %v4713_v6 }
  0x22   : > { %4322 = vmatprep.subr.bf16.mxu0 %v4714_v7  ;;  %p5003_p12 = pnand %p5002_p11, %p5168_p5  ;;  %p5010_p2 = por %p5009_p1, %p5008_p0 }
  0x24   : > { %p5004_p13 = pneg %p5003_p12 }
  0x25   : > { %4323 = vmatpush3.bf16.msra.mxu0 %v4714_v7 }
  0x26   : > { %4324 = vmatprep.subr.bf16.mxu0 %v4715_v8  ;;  %p5011_p3 = pnand %p5010_p2, %p5004_p13 }
  0x29   : > { %4325 = vmatpush3.bf16.msra.mxu0 %v4715_v8 }
  0x2a   : > { %4326 = vmatprep.subr.bf16.mxu0 %v4716_v9 }
  0x2d   : > { %4327 = vmatpush3.bf16.msra.mxu0 %v4716_v9 }
  0x2e   : > { %4344 = vmatprep.subr.bf16.mxu0 %v5065_v2 }
  0x30   : > { %4329 = vmatmul.mubr.bf16.vlgmr.msra.gmra.mrb[0].mxu0 %v4718_v10  ;;  %v4735_v10 = vld [vmem:[%s6269_s3 + $0x70] sm:$0xff]  }
  0x31   : > { %4332 = vmatprep.mubr.bf16.mxu0 %v4719_v11  ;;  %4345 = vmatpush3.bf16.msra.mxu0 %v4725_v12 }
  0x32   : > { %4346 = vmatprep.subr.bf16.mxu0 %v5065_v2 }
  0x35   : > { %4347 = vmatpush3.bf16.msra.mxu0 %v4726_v13 }
  0x36   : > { %4348 = vmatprep.subr.bf16.mxu0 %v5065_v2 }
  0x38   : > { %4333 = vmatmul.mubr.bf16.gmra.mrb[4].mxu0 %v4720_v14 }
  0x39   : > { %4336 = vmatprep.mubr.bf16.mxu0 %v4721_v15  ;;  %4349 = vmatpush3.bf16.msra.mxu0 %v4728_v21 }
  0x3a   : > { %4350 = vmatprep.subr.bf16.mxu0 %v5065_v2 }
  0x3d   : > { %4351 = vmatpush3.bf16.msra.mxu0 %v4731_v24 }
  0x3e   : > { %4364 = vmatprep.subr.bf16.mxu0 %v5065_v2 }
  0x40   : > { %4337 = vmatmul.mubr.bf16.gmra.mrb[8].mxu0 %v4722_v16 }
  0x41   : > { %4340 = vmatprep.mubr.bf16.mxu0 %v4723_v17 }
  0x48   : > { %4341 = vmatmul.mubr.bf16.gmra.mrb[12].mxu0 %v4724_v18 }
  0x49   : > { %4352 = vmatprep.mubr.msk.bf16.mxu0 %vm5066_vm0, %v5065_v2 }
 0x103   : > { %v4330_v26 = vpop.f32.mrb[0].mxu0 }
 0x104   : > { %v563_v27 = vadd.f32 %v4330_v26, %v5270_v25  ;;  %v554_v28 = vpop.f32.mrb[1].mxu0 }
 0x105   : > { %v555_v29 = vadd.f32 %v5270_v25, %v554_v28  ;;  %v4331_v30 = vpop.f32.mrb[2].mxu0 }
 0x106   : > { %v619_v31 = vmax.f32 %v563_v27, 0.0  ;;  %v566_v32 = vadd.f32 %v4331_v30, %v5270_v25  ;;  %v557_v33 = vpop.f32.mrb[3].mxu0 }
 0x107   : > { %v617_v34 = vmax.f32 %v555_v29, 0.0  ;;  %v558_v35 = vadd.f32 %v5270_v25, %v557_v33 }
 0x108   : > { %636 = vst.msk [vmem:[#allocation2 + $0x10] sm:$0xff] %vm633_vm1, %v619_v31  ;;  %v620_v36 = vmax.f32 %v566_v32, 0.0  ;;  %v4738_v31 = vld [vmem:[%s6269_s3 + $0xa0] sm:$0xff]   ;;  %v4740_v32 = vld [vmem:[%s6269_s3 + $0xa8] sm:$0xff]  }
 0x109   : > { %634 = vst.msk [vmem:[#allocation2] sm:$0xff] %vm633_vm1, %v617_v34  ;;  %v618_v37 = vmax.f32 %v558_v35, 0.0 }
 0x10a   : > { %637 = vst.msk [vmem:[#allocation2 + $0x18] sm:$0xff] %vm633_vm1, %v620_v36 }
 0x10b   : > { %635 = vst.msk [vmem:[#allocation2 + $0x8] sm:$0xff] %vm633_vm1, %v618_v37  ;;  %v4334_v38 = vpop.f32.mrb[4].mxu0  ;;  %v4737_v37 = vld [vmem:[%s6269_s3 + $0x40] sm:$0xff]  }
 0x10c   : > { %v579_v39 = vadd.f32 %v4334_v38, %v5270_v25  ;;  %v570_v40 = vpop.f32.mrb[5].mxu0 }
 0x10d   : > { %v571_v41 = vadd.f32 %v5270_v25, %v570_v40  ;;  %v4335_v42 = vpop.f32.mrb[6].mxu0  ;;  %v4739_v40 = vld [vmem:[%s6269_s3 + $0x48] sm:$0xff]  }
 0x10e   : > { %v623_v43 = vmax.f32 %v579_v39, 0.0  ;;  %v573_v44 = vpop.f32.mrb[7].mxu0  ;;  %v4742_v39 = vld [vmem:[%s6269_s3 + $0xb0] sm:$0xff]  }
 0x10f   : > { %v621_v45 = vmax.f32 %v571_v41, 0.0  ;;  %v574_v46 = vadd.f32 %v5270_v25, %v573_v44  ;;  %v5285_v48 = vld [vmem:[#allocation2 + $0x10] sm:$0xff] }
 0x110   : > { %640 = vst.msk [vmem:[#allocation2 + $0x30] sm:$0xff] %vm633_vm1, %v623_v43  ;;  %v650_v36 = vld [vmem:[#allocation2] sm:$0xff]  ;;  %v4744_v43 = vld [vmem:[%s6269_s3 + $0xb8] sm:$0xff]  }
 0x111   : > { %638 = vst.msk [vmem:[#allocation2 + $0x20] sm:$0xff] %vm633_vm1, %v621_v45  ;;  %v622_v47 = vmax.f32 %v574_v46, 0.0  ;;  %v5287_v49 = vld [vmem:[#allocation2 + $0x18] sm:$0xff]  ;;  %v4741_v45 = vld [vmem:[%s6269_s3 + $0x50] sm:$0xff]  }
 0x112   : > { %v657_v51 = vpack.c.bf16 %v5287_v49, %v5285_v48  ;;  %v667_v52 = vld [vmem:[#allocation2 + $0x1] sm:$0xff]  ;;  %v5294_v53 = vld [vmem:[#allocation2 + $0x9] sm:$0xff]  ;;  %v5324_v8 = vld [vmem:[#allocation2 + $0x11] sm:$0xff] }
 0x113   : > { %639 = vst.msk [vmem:[#allocation2 + $0x28] sm:$0xff] %vm633_vm1, %v622_v47  ;;  %v4338_v54 = vpop.f32.mrb[8].mxu0  ;;  %v673_v55 = vpack.c.bf16 %v5294_v53, %v667_v52  ;;  %v5376_v33 = vld [vmem:[#allocation2 + $0x8] sm:$0xff]  ;;  %v4743_v46 = vld [vmem:[%s6269_s3 + $0x58] sm:$0xff]  }
 0x114   : > { %v595_v56 = vadd.f32 %v4338_v54, %v5270_v25  ;;  %v586_v57 = vpop.f32.mrb[9].mxu0  ;;  %4377 = vmatmul.mubr.msk.bf16.vlgmr.msra.gmra.mrb[0].mxu1 %vm633_vm1, %v657_v51  ;;  %v656_v38 = vpack.c.bf16 %v5376_v33, %v650_v36  ;;  %v4745_v51 = vld [vmem:[%s6269_s3 + $0x80] sm:$0xff]   ;;  %v1209_v54 = vpack.c.bf16 %v5324_v8, %v5294_v53 }
 0x115   : > { %v587_v58 = vadd.f32 %v5270_v25, %v586_v57  ;;  %v4339_v59 = vpop.f32.mrb[10].mxu0  ;;  %4353 = vmatmul.mubr.msk.bf16.vlgmr.msra.gmra.mrb[16].mxu0 %vm633_vm1, %v673_v55  ;;  %4405 = vmatpush3.bf16.msra.mxu1 %v4733_v50  ;;  %v4747_v55 = vld [vmem:[%s6269_s3 + $0xe0] sm:$0xff]  }
 0x116   : > { %v627_v61 = vmax.f32 %v595_v56, 0.0  ;;  %v598_v62 = vadd.f32 %v4339_v59, %v5270_v25  ;;  %v589_v63 = vpop.f32.mrb[11].mxu0  ;;  %4365 = vmatpush3.bf16.msra.mxu0 %v5230_v19  ;;  %4406 = vmatprep.subr.bf16.mxu1 %v5065_v2  ;;  %v4736_v19 = vld [vmem:[%s6269_s3 + $0x78] sm:$0xff]   ;;  %v4746_v56 = vld [vmem:[%s6269_s3 + $0x88] sm:$0xff]   ;;  %v4748_v59 = vld [vmem:[%s6269_s3 + $0x90] sm:$0xff]  }
 0x117   : > { %v625_v0 = vmax.f32 %v587_v58, 0.0  ;;  %v590_v1 = vadd.f32 %v5270_v25, %v589_v63  ;;  %4366 = vmatprep.subr.bf16.mxu0 %v5065_v2  ;;  %4356 = vmatprep.mubr.msk.bf16.mxu0 %vm5066_vm0, %v5065_v2  ;;  %v4749_v58 = vld [vmem:[%s6269_s3 + $0xe8] sm:$0xff]   ;;  %v4751_v63 = vld [vmem:[%s6269_s3 + $0x98] sm:$0xff]  }
 0x118   : > { %644 = vst.msk [vmem:[#allocation2 + $0x50] sm:$0xff] %vm633_vm1, %v627_v61  ;;  %v628_v3 = vmax.f32 %v598_v62, 0.0  ;;  %4380 = vmatprep.mubr.msk.bf16.mxu1 %vm5066_vm0, %v5065_v2  ;;  %v5315_v4 = vld [vmem:[#allocation2 + $0x19] sm:$0xff]  ;;  %v4750_v62 = vld [vmem:[%s6269_s3 + $0xf0] sm:$0xff]  }
 0x119   : > { %v5317_v5 = vld [vmem:[#allocation2 + $0x20] sm:$0xff]  ;;  %642 = vst.msk [vmem:[#allocation2 + $0x40] sm:$0xff] %vm633_vm1, %v625_v0  ;;  %v626_v6 = vmax.f32 %v590_v1, 0.0  ;;  %4407 = vmatpush3.bf16.msra.mxu1 %v4734_v60  ;;  %v674_v12 = vpack.c.bf16 %v5315_v4, %v5324_v8  ;;  %v4752_v0 = vld [vmem:[%s6269_s3 + $0xf8] sm:$0xff]  }
 0x11a   : > { %v1097_v7 = vpack.c.bf16 %v5317_v5, %v5287_v49  ;;  %645 = vst.msk [vmem:[#allocation2 + $0x58] sm:$0xff] %vm633_vm1, %v628_v3  ;;  %4367 = vmatpush3.bf16.msra.mxu0 %v5237_v20  ;;  %v655_v9 = vld [vmem:[#allocation2 + $0x28] sm:$0x3f]  ;;  %4408 = vmatprep.subr.bf16.mxu1 %v5065_v2 }
 0x11b   : > { %643 = vst.msk [vmem:[#allocation2 + $0x48] sm:$0xff] %vm633_vm1, %v626_v6  ;;  %v4342_v11 = vpop.f32.mrb[12].mxu0  ;;  %v658_v13 = vpack.c.bf16 %v655_v9, %v5317_v5  ;;  %4368 = vmatprep.subr.bf16.mxu0 %v5065_v2  ;;  %v5350_v26 = vld [vmem:[#allocation2 + $0x21] sm:$0xff]  ;;  %v1207_v3 = vld [vmem:[#allocation2 + $0x29] sm:$0xff] }
 0x11c   : > { %v611_v14 = vadd.f32 %v4342_v11, %v5270_v25  ;;  %v602_v15 = vpop.f32.mrb[13].mxu0  ;;  %v1210_v61 = vpack.c.bf16 %v5350_v26, %v5315_v4  ;;  %v1208_v4 = vld [vmem:[#allocation2 + $0x31] sm:$0x3f]  ;;  %v1096_v11 = vpack.c.bf16 %v5285_v48, %v5376_v33 }
 0x11d   : > { %4357 = vmatmul.mubr.msk.bf16.gmra.mrb[20].mxu0 %vm633_vm1, %v674_v12  ;;  %4381 = vmatmul.mubr.msk.bf16.gmra.mrb[4].mxu1 %vm633_vm1, %v658_v13  ;;  %v603_v16 = vadd.f32 %v5270_v25, %v602_v15  ;;  %v4343_v17 = vpop.f32.mrb[14].mxu0  ;;  %v1211_v9 = vpack.c.bf16 %v1208_v4, %v1207_v3  ;;  %v4754_v13 = vld [vmem:[%s6269_s3 + $0xc8] sm:$0xff]   ;;  %v4755_v48 = vld [vmem:[%s6269_s3 + $0xd0] sm:$0xff]   ;;  %v4756_v15 = vld [vmem:[%s6269_s3 + $0xd8] sm:$0xff]  }
 0x11e   : > { %v631_v18 = vmax.f32 %v611_v14, 0.0  ;;  %4409 = vmatpush3.bf16.msra.mxu1 %v4735_v10  ;;  %4369 = vmatpush3.bf16.msra.mxu0 %v5247_v22  ;;  %v605_v20 = vpop.f32.mrb[15].mxu0  ;;  %v672_v22 = vld [vmem:[#allocation2 + $0x29] sm:$0x3f]  ;;  %v4753_v10 = vld [vmem:[%s6269_s3 + $0xc0] sm:$0xff]  }
 0x11f   : > { %v629_v21 = vmax.f32 %v603_v16, 0.0  ;;  %4410 = vmatprep.subr.bf16.mxu1 %v5065_v2  ;;  %4360 = vmatprep.mubr.msk.bf16.mxu0 %vm5066_vm0, %v5065_v2  ;;  %v606_v24 = vadd.f32 %v5270_v25, %v605_v20  ;;  %v675_v25 = vpack.c.bf16 %v672_v22, %v5350_v26  ;;  %v5442_v53 = vld [vmem:[#allocation2 + $0x50] sm:$0xff]  ;;  %v1094_v17 = vld [vmem:[#allocation2 + $0x28] sm:$0xff]  ;;  %v4757_v22 = vld [vmem:[%s6271_s5 + $0x20] sm:$0xff]  }
 0x120   : > { %648 = vst.msk [vmem:[#allocation2 + $0x70] sm:$0xff] %vm633_vm1, %v631_v18  ;;  %4412 = vmatprep.mubr.msk.bf16.mxu1 %vm5066_vm0, %v5065_v2  ;;  %4370 = vmatprep.subr.bf16.mxu0 %v5065_v2  ;;  %v864_v47 = vld [vmem:[#allocation2 + $0x40] sm:$0xff]  ;;  %v1095_v16 = vld [vmem:[#allocation2 + $0x30] sm:$0x3f] }
 0x121   : > { %646 = vst.msk [vmem:[#allocation2 + $0x60] sm:$0xff] %vm633_vm1, %v629_v21  ;;  %v630_v27 = vmax.f32 %v606_v24, 0.0  ;;  %v5444_v57 = vld [vmem:[#allocation2 + $0x58] sm:$0xff] }
 0x122   : > { %4411 = vmatpush3.bf16.msra.mxu1 %v4736_v19  ;;  %v977_v28 = vld [vmem:[#allocation2 + $0x41] sm:$0xff]  ;;  %v5354_v29 = vld [vmem:[#allocation2 + $0x49] sm:$0xff]  ;;  %4371 = vmatpush3.bf16.msra.mxu0 %v5255_v23  ;;  %v5371_v23 = vld [vmem:[#allocation2 + $0x51] sm:$0xff]  ;;  %v871_v60 = vpack.c.bf16 %v5444_v57, %v5442_v53 }
 0x123   : > { %v983_v30 = vpack.c.bf16 %v5354_v29, %v977_v28  ;;  %647 = vst.msk [vmem:[#allocation2 + $0x68] sm:$0xff] %vm633_vm1, %v630_v27  ;;  %4384 = vmatprep.subr.bf16.mxu0 %v5065_v2  ;;  %4444 = vmatprep.subr.bf16.mxu1 %v5065_v2  ;;  %v5420_v50 = vld [vmem:[#allocation2 + $0x48] sm:$0xff]  ;;  %v1435_v12 = vpack.c.bf16 %v5371_v23, %v5354_v29  ;;  %v4760_v28 = vld [vmem:[%s6271_s5 + $0x38] sm:$0xff]   ;;  %v5548_v29 = vld [vmem:[%s6271_s5] sm:$0xff]  }
 0x124   : > { %v870_v52 = vpack.c.bf16 %v5420_v50, %v864_v47  ;;  %v1322_v19 = vpack.c.bf16 %v5442_v53, %v5420_v50  ;;  %v4758_v27 = vld [vmem:[%s6271_s5 + $0x28] sm:$0xff]  }
 0x125   : > { %4361 = vmatmul.mubr.msk.bf16.gmra.mrb[24].mxu0 %vm633_vm1, %v675_v25  ;;  %4413 = vmatmul.mubr.msk.bf16.vlgmr.msra.gmra.mrb[8].mxu1 %vm633_vm1, %v983_v30 }
 0x126   : > { %4372 = vmatprep.mubr.msk.bf16.mxu0 %vm5066_vm0, %v5065_v2  ;;  %4416 = vmatprep.mubr.msk.bf16.mxu1 %vm5066_vm0, %v5065_v2 }
 0x127   : > { %4445 = vmatpush3.bf16.msra.mxu1 %v4738_v31  ;;  %v1434_v5 = vld [vmem:[#allocation2 + $0x71] sm:$0x3f] }
 0x128   : > { %v5378_v34 = vld [vmem:[#allocation2 + $0x59] sm:$0xff]  ;;  %4446 = vmatprep.subr.bf16.mxu1 %v5065_v2  ;;  %v1321_v24 = vld [vmem:[#allocation2 + $0x70] sm:$0x3f] }
 0x129   : > { %v984_v35 = vpack.c.bf16 %v5378_v34, %v5371_v23  ;;  %v868_v6 = vld [vmem:[#allocation2 + $0x60] sm:$0xff] }
 0x12a   : > { %v5398_v41 = vld [vmem:[#allocation2 + $0x61] sm:$0xff]  ;;  %v982_v42 = vld [vmem:[#allocation2 + $0x69] sm:$0x3f]  ;;  %v1323_v20 = vpack.c.bf16 %v868_v6, %v5444_v57 }
 0x12b   : > { %4447 = vmatpush3.bf16.msra.mxu1 %v4740_v32  ;;  %v985_v44 = vpack.c.bf16 %v982_v42, %v5398_v41  ;;  %v869_v1 = vld [vmem:[#allocation2 + $0x68] sm:$0x3f]  ;;  %v1436_v14 = vpack.c.bf16 %v5398_v41, %v5378_v34 }
 0x12c   : > { %4448 = vmatprep.subr.bf16.mxu1 %v5065_v2  ;;  %v872_v8 = vpack.c.bf16 %v869_v1, %v868_v6  ;;  %v1433_v49 = vld [vmem:[#allocation2 + $0x69] sm:$0xff] }
 0x12d   : > { %4373 = vmatmul.mubr.msk.bf16.vlgmr.msra.gmra.mrb[28].mxu0 %vm633_vm1, %v656_v38  ;;  %4417 = vmatmul.mubr.msk.bf16.gmra.mrb[12].mxu1 %vm633_vm1, %v984_v35  ;;  %v1437_v18 = vpack.c.bf16 %v1434_v5, %v1433_v49  ;;  %v1320_v21 = vld [vmem:[#allocation2 + $0x68] sm:$0xff] }
 0x12e   : > { %4385 = vmatpush3.bf16.msra.mxu0 %v4737_v37  ;;  %4420 = vmatprep.mubr.msk.bf16.mxu1 %vm5066_vm0, %v5065_v2  ;;  %v1324_v26 = vpack.c.bf16 %v1321_v24, %v1320_v21 }
 0x12f   : > { %4386 = vmatprep.subr.bf16.mxu0 %v5065_v2  ;;  %4449 = vmatpush3.bf16.msra.mxu1 %v4742_v39 }
 0x130   : > { %4450 = vmatprep.subr.bf16.mxu1 %v5065_v2  ;;  %4392 = vmatprep.mubr.msk.bf16.mxu0 %vm5066_vm0, %v5065_v2 }
 0x132   : > { %4387 = vmatpush3.bf16.msra.mxu0 %v4739_v40 }
 0x133   : > { %4388 = vmatprep.subr.bf16.mxu0 %v5065_v2  ;;  %4451 = vmatpush3.bf16.msra.mxu1 %v4744_v43 }
 0x134   : > { %4484 = vmatprep.subr.bf16.mxu1 %v5065_v2 }
 0x135   : > { %4421 = vmatmul.mubr.msk.bf16.gmra.mrb[16].mxu1 %vm633_vm1, %v985_v44 }
 0x136   : > { %4389 = vmatpush3.bf16.msra.mxu0 %v4741_v45  ;;  %4452 = vmatprep.mubr.msk.bf16.mxu1 %vm5066_vm0, %v5065_v2 }
 0x137   : > { %4390 = vmatprep.subr.bf16.mxu0 %v5065_v2 }
 0x13a   : > { %4391 = vmatpush3.bf16.msra.mxu0 %v4743_v46 }
 0x13b   : > { %4424 = vmatprep.subr.bf16.mxu0 %v5065_v2 }
 0x13d   : > { %4393 = vmatmul.mubr.msk.bf16.vlgmr.msra.gmra.mrb[32].mxu0 %vm633_vm1, %v870_v52  ;;  %4453 = vmatmul.mubr.msk.bf16.vlgmr.msra.gmra.mrb[20].mxu1 %vm633_vm1, %v1209_v54 }
 0x13e   : > { %4425 = vmatpush3.bf16.msra.mxu0 %v4745_v51  ;;  %4396 = vmatprep.mubr.msk.bf16.mxu0 %vm5066_vm0, %v5065_v2 }
 0x13f   : > { %4426 = vmatprep.subr.bf16.mxu0 %v5065_v2  ;;  %4456 = vmatprep.mubr.msk.bf16.mxu1 %vm5066_vm0, %v5065_v2 }
 0x140   : > { %4485 = vmatpush3.bf16.msra.mxu1 %v4747_v55 }
 0x141   : > { %4486 = vmatprep.subr.bf16.mxu1 %v5065_v2 }
 0x142   : > { %4427 = vmatpush3.bf16.msra.mxu0 %v4746_v56 }
 0x143   : > { %4428 = vmatprep.subr.bf16.mxu0 %v5065_v2 }
 0x144   : > { %4487 = vmatpush3.bf16.msra.mxu1 %v4749_v58 }
 0x145   : > { %4397 = vmatmul.mubr.msk.bf16.gmra.mrb[36].mxu0 %vm633_vm1, %v871_v60  ;;  %4457 = vmatmul.mubr.msk.bf16.gmra.mrb[24].mxu1 %vm633_vm1, %v1210_v61 }
 0x146   : > { %4429 = vmatpush3.bf16.msra.mxu0 %v4748_v59  ;;  %4400 = vmatprep.mubr.msk.bf16.mxu0 %vm5066_vm0, %v5065_v2 }
 0x147   : > { %4460 = vmatprep.mubr.msk.bf16.mxu1 %vm5066_vm0, %v5065_v2  ;;  %4488 = vmatprep.subr.bf16.mxu1 %v5065_v2 }
 0x148   : > { %4430 = vmatprep.subr.bf16.mxu0 %v5065_v2  ;;  %4489 = vmatpush3.bf16.msra.mxu1 %v4750_v62 }
 0x149   : > { %4490 = vmatprep.subr.bf16.mxu1 %v5065_v2 }
 0x14a   : > { %4431 = vmatpush3.bf16.msra.mxu0 %v4751_v63 }
 0x14b   : > { %4464 = vmatprep.subr.bf16.mxu0 %v5065_v2 }
 0x14c   : > { %4491 = vmatpush3.bf16.msra.mxu1 %v4752_v0 }
 0x14d   : > { %4401 = vmatmul.mubr.msk.bf16.gmra.mrb[40].mxu0 %vm633_vm1, %v872_v8  ;;  %4461 = vmatmul.mubr.msk.bf16.gmra.mrb[28].mxu1 %vm633_vm1, %v1211_v9 }
 0x14e   : > { %4432 = vmatprep.mubr.msk.bf16.mxu0 %vm5066_vm0, %v5065_v2  ;;  %4492 = vmatprep.mubr.msk.bf16.mxu1 %vm5066_vm0, %v5065_v2 }
 0x155   : > { %4433 = vmatmul.mubr.msk.bf16.vlgmr.msra.gmra.mrb[44].mxu0 %vm633_vm1, %v1096_v11  ;;  %4493 = vmatmul.mubr.msk.bf16.vlgmr.msra.gmra.mrb[32].mxu1 %vm633_vm1, %v1435_v12 }
 0x156   : > { %4465 = vmatpush3.bf16.msra.mxu0 %v4753_v10  ;;  %4436 = vmatprep.mubr.msk.bf16.mxu0 %vm5066_vm0, %v5065_v2 }
 0x157   : > { %4466 = vmatprep.subr.bf16.mxu0 %v5065_v2  ;;  %4496 = vmatprep.mubr.msk.bf16.mxu1 %vm5066_vm0, %v5065_v2 }
 0x15a   : > { %4467 = vmatpush3.bf16.msra.mxu0 %v4754_v13 }
 0x15b   : > { %4468 = vmatprep.subr.bf16.mxu0 %v5065_v2 }
 0x15d   : > { %4437 = vmatmul.mubr.msk.bf16.gmra.mrb[48].mxu0 %vm633_vm1, %v1097_v7  ;;  %4497 = vmatmul.mubr.msk.bf16.gmra.mrb[36].mxu1 %vm633_vm1, %v1436_v14  ;;  %v1098_v7 = vpack.c.bf16 %v1095_v16, %v1094_v17 }
 0x15e   : > { %4469 = vmatpush3.bf16.msra.mxu0 %v4755_v48  ;;  %4440 = vmatprep.mubr.msk.bf16.mxu0 %vm5066_vm0, %v5065_v2 }
 0x15f   : > { %4500 = vmatprep.mubr.msk.bf16.mxu1 %vm5066_vm0, %v5065_v2  ;;  %4470 = vmatprep.subr.bf16.mxu0 %v5065_v2 }
 0x162   : > { %4471 = vmatpush3.bf16.msra.mxu0 %v4756_v15 }
 0x163   : > { %4504 = vmatprep.subr.bf16.mxu0 %v4757_v22 }
 0x165   : > { %4441 = vmatmul.mubr.msk.bf16.gmra.mrb[52].mxu0 %vm633_vm1, %v1098_v7  ;;  %4501 = vmatmul.mubr.msk.bf16.gmra.mrb[40].mxu1 %vm633_vm1, %v1437_v18 }
 0x166   : > { %4472 = vmatprep.mubr.msk.bf16.mxu0 %vm5066_vm0, %v5065_v2 }
 0x16d   : > { %4473 = vmatmul.mubr.msk.bf16.vlgmr.msra.gmra.mrb[56].mxu0 %vm633_vm1, %v1322_v19 }
 0x16e   : > { %4476 = vmatprep.mubr.msk.bf16.mxu0 %vm5066_vm0, %v5065_v2  ;;  %4505 = vmatpush3.bf16.msra.mxu0 %v4757_v22 }
 0x16f   : > { %4506 = vmatprep.subr.bf16.mxu0 %v4758_v27 }
 0x172   : > { %4507 = vmatpush3.bf16.msra.mxu0 %v4758_v27 }
 0x175   : > { %4477 = vmatmul.mubr.msk.bf16.gmra.mrb[60].mxu0 %vm633_vm1, %v1323_v20 }
 0x176   : > { %4480 = vmatprep.mubr.msk.bf16.mxu0 %vm5066_vm0, %v5065_v2  ;;  %v4759_v2 = vld [vmem:[%s6271_s5 + $0x30] sm:$0xff]  }
 0x177   : > { %4508 = vmatprep.subr.bf16.mxu0 %v4759_v2 }
 0x178   : > { %4509 = vmatpush3.bf16.msra.mxu0 %v4759_v2 }
 0x179   : > { %4510 = vmatprep.subr.bf16.mxu0 %v4760_v28 }
 0x17c   : > { %4511 = vmatpush3.bf16.msra.mxu0 %v4760_v28 }
 0x17d   : > { %4481 = vmatmul.mubr.msk.bf16.gmra.mrb[64].mxu0 %vm633_vm1, %v1324_v26  ;;  %4516 = vmatprep.subr.bf16.mxu0 %v5548_v29 }
 0x1e7   : > { %v849_v25 = vpop.f32.mrb[0].mxu1 }
 0x1e8   : > { %v751_v30 = vpop.f32.mrb[16].mxu0  ;;  %v4378_v31 = vpop.f32.mrb[1].mxu1 }
 0x1e9   : > { %v4354_v23 = vpop.f32.mrb[17].mxu0  ;;  %v852_v32 = vpop.f32.mrb[2].mxu1 }
 0x1ea   : > { %v754_v33 = vpop.f32.mrb[18].mxu0  ;;  %v4379_v34 = vpop.f32.mrb[3].mxu1 }
 0x1eb   : > { %v4355_v35 = vpop.f32.mrb[19].mxu0 }
 0x1f0   : > { %v759_v36 = vpop.f32.mrb[20].mxu0  ;;  %v857_v37 = vpop.f32.mrb[4].mxu1 }
 0x1f1   : > { %v850_v38 = vadd.f32 %v849_v25, %v759_v36  ;;  %v4358_v39 = vpop.f32.mrb[21].mxu0  ;;  %v4382_v40 = vpop.f32.mrb[5].mxu1 }
 0x1f2   : > { %v762_v41 = vpop.f32.mrb[22].mxu0  ;;  %v860_v42 = vpop.f32.mrb[6].mxu1 }
 0x1f3   : > { %v853_v43 = vadd.f32 %v852_v32, %v762_v41  ;;  %v4359_v44 = vpop.f32.mrb[23].mxu0  ;;  %v4383_v45 = vpop.f32.mrb[7].mxu1 }
 0x1f8   : > { %v767_v46 = vpop.f32.mrb[24].mxu0  ;;  %v1061_v47 = vpop.f32.mrb[8].mxu1 }
 0x1f9   : > { %v858_v50 = vadd.f32 %v857_v37, %v767_v46  ;;  %v4362_v51 = vpop.f32.mrb[25].mxu0  ;;  %v4414_v52 = vpop.f32.mrb[9].mxu1 }
 0x1fa   : > { %v770_v54 = vpop.f32.mrb[26].mxu0  ;;  %v1064_v55 = vpop.f32.mrb[10].mxu1 }
 0x1fb   : > { %v861_v56 = vadd.f32 %v860_v42, %v770_v54  ;;  %v4363_v53 = vpop.f32.mrb[27].mxu0  ;;  %v4415_v57 = vpop.f32.mrb[11].mxu1 }
 0x200   : > { %v841_v58 = vpop.f32.mrb[28].mxu0  ;;  %v1069_v59 = vpop.f32.mrb[12].mxu1 }
 0x201   : > { %v842_v60 = vadd.f32 %v841_v58, %v751_v30  ;;  %v4374_v61 = vpop.f32.mrb[29].mxu0  ;;  %v4418_v62 = vpop.f32.mrb[13].mxu1 }
 0x202   : > { %v844_v63 = vpop.f32.mrb[30].mxu0  ;;  %v1072_v0 = vpop.f32.mrb[14].mxu1 }
 0x203   : > { %v845_v1 = vadd.f32 %v844_v63, %v754_v33  ;;  %v4375_v3 = vpop.f32.mrb[31].mxu0  ;;  %v4419_v4 = vpop.f32.mrb[15].mxu1 }
 0x208   : > { %v1077_v6 = vpop.f32.mrb[16].mxu1 }
 0x209   : > { %v4422_v8 = vpop.f32.mrb[17].mxu1 }
 0x20a   : > { %v1080_v9 = vpop.f32.mrb[18].mxu1 }
 0x20b   : > { %v4423_v10 = vpop.f32.mrb[19].mxu1 }
 0x210   : > { %v948_v11 = vpop.f32.mrb[32].mxu0  ;;  %v1287_v12 = vpop.f32.mrb[20].mxu1 }
 0x211   : > { %v971_v13 = vadd.f32 %v948_v11, %v842_v60  ;;  %v4394_v48 = vpop.f32.mrb[33].mxu0  ;;  %v4454_v14 = vpop.f32.mrb[21].mxu1 }
 0x212   : > { %v951_v15 = vpop.f32.mrb[34].mxu0  ;;  %v1290_v16 = vpop.f32.mrb[22].mxu1 }
 0x213   : > { %v972_v17 = vadd.f32 %v951_v15, %v845_v1  ;;  %v4395_v49 = vpop.f32.mrb[35].mxu0  ;;  %v4455_v5 = vpop.f32.mrb[23].mxu1  ;;  %v1084_v7 = vadd.f32 %v1061_v47, %v971_v13 }
 0x215   : > { %v1085_v18 = vadd.f32 %v1064_v55, %v972_v17 }
 0x218   : > { %v956_v19 = vpop.f32.mrb[36].mxu0  ;;  %v1295_v20 = vpop.f32.mrb[24].mxu1 }
 0x219   : > { %v973_v21 = vadd.f32 %v956_v19, %v850_v38  ;;  %v4398_v24 = vpop.f32.mrb[37].mxu0  ;;  %v4458_v26 = vpop.f32.mrb[25].mxu1  ;;  %v3952_v19 = vld [vmem:[%s6270_s4] ss:$0 sm:$0xff] }
 0x21a   : > { %v959_v22 = vpop.f32.mrb[38].mxu0  ;;  %v1298_v27 = vpop.f32.mrb[26].mxu1 }
 0x21b   : > { %v974_v2 = vadd.f32 %v959_v22, %v853_v43  ;;  %v4399_v28 = vpop.f32.mrb[39].mxu0  ;;  %v4459_v25 = vpop.f32.mrb[27].mxu1  ;;  %v1086_v30 = vadd.f32 %v1069_v59, %v973_v21 }
 0x21d   : > { %v1087_v31 = vadd.f32 %v1072_v0, %v974_v2 }
 0x220   : > { %v964_v23 = vpop.f32.mrb[40].mxu0  ;;  %v1303_v32 = vpop.f32.mrb[28].mxu1 }
 0x221   : > { %v975_v33 = vadd.f32 %v964_v23, %v858_v50  ;;  %v4402_v34 = vpop.f32.mrb[41].mxu0  ;;  %v4462_v35 = vpop.f32.mrb[29].mxu1 }
 0x222   : > { %v967_v36 = vpop.f32.mrb[42].mxu0  ;;  %v1306_v37 = vpop.f32.mrb[30].mxu1 }
 0x223   : > { %v976_v39 = vadd.f32 %v967_v36, %v861_v56  ;;  %v4403_v40 = vpop.f32.mrb[43].mxu0  ;;  %v4463_v41 = vpop.f32.mrb[31].mxu1  ;;  %v1088_v38 = vadd.f32 %v1077_v6, %v975_v33 }
 0x225   : > { %v1089_v42 = vadd.f32 %v1080_v9, %v976_v39 }
 0x228   : > { %v1174_v44 = vpop.f32.mrb[44].mxu0  ;;  %v1513_v45 = vpop.f32.mrb[32].mxu1 }
 0x229   : > { %v1197_v46 = vadd.f32 %v1174_v44, %v1084_v7  ;;  %v4434_v43 = vpop.f32.mrb[45].mxu0  ;;  %v4494_v47 = vpop.f32.mrb[33].mxu1 }
 0x22a   : > { %v1177_v51 = vpop.f32.mrb[46].mxu0  ;;  %v1516_v52 = vpop.f32.mrb[34].mxu1 }
 0x22b   : > { %v1198_v54 = vadd.f32 %v1177_v51, %v1085_v18  ;;  %v4435_v55 = vpop.f32.mrb[47].mxu0  ;;  %v4495_v53 = vpop.f32.mrb[35].mxu1  ;;  %v1310_v50 = vadd.f32 %v1287_v12, %v1197_v46 }
 0x22d   : > { %v1311_v57 = vadd.f32 %v1290_v16, %v1198_v54 }
 0x230   : > { %v1182_v58 = vpop.f32.mrb[48].mxu0  ;;  %v1521_v59 = vpop.f32.mrb[36].mxu1 }
 0x231   : > { %v1199_v60 = vadd.f32 %v1182_v58, %v1086_v30  ;;  %v4438_v56 = vpop.f32.mrb[49].mxu0  ;;  %v4498_v61 = vpop.f32.mrb[37].mxu1 }
 0x232   : > { %v1185_v62 = vpop.f32.mrb[50].mxu0  ;;  %v1524_v63 = vpop.f32.mrb[38].mxu1 }
 0x233   : > { %v1200_v0 = vadd.f32 %v1185_v62, %v1087_v31  ;;  %v4439_v1 = vpop.f32.mrb[51].mxu0  ;;  %v4499_v3 = vpop.f32.mrb[39].mxu1  ;;  %v1312_v4 = vadd.f32 %v1295_v20, %v1199_v60 }
 0x234   : > { %v4763_v1 = vld [vmem:[%s6271_s5 + $0x10] sm:$0xff]   ;;  %v4764_v3 = vld [vmem:[%s6271_s5 + $0x18] sm:$0xff]  }
 0x235   : > { %v1313_v6 = vadd.f32 %v1298_v27, %v1200_v0 }
 0x238   : > { %v1190_v8 = vpop.f32.mrb[52].mxu0  ;;  %v1529_v9 = vpop.f32.mrb[40].mxu1 }
 0x239   : > { %v1201_v10 = vadd.f32 %v1190_v8, %v1088_v38  ;;  %v4442_v11 = vpop.f32.mrb[53].mxu0  ;;  %v4502_v13 = vpop.f32.mrb[41].mxu1 }
 0x23a   : > { %v1193_v48 = vpop.f32.mrb[54].mxu0  ;;  %v1532_v12 = vpop.f32.mrb[42].mxu1  ;;  %v4766_v11 = vld [vmem:[%s6271_s5 + $0x48] sm:$0xff]  }
 0x23b   : > { %v1202_v14 = vadd.f32 %v1193_v48, %v1089_v42  ;;  %v4443_v15 = vpop.f32.mrb[55].mxu0  ;;  %v4503_v16 = vpop.f32.mrb[43].mxu1  ;;  %v1314_v17 = vadd.f32 %v1303_v32, %v1201_v10  ;;  %v4767_v48 = vld [vmem:[%s6271_s5 + $0x50] sm:$0xff]  }
 0x23d   : > { %v1315_v49 = vadd.f32 %v1306_v37, %v1202_v14  ;;  %v4769_v14 = vld [vmem:[%s6271_s5 + $0x60] sm:$0xff]  }
 0x240   : > { %v1400_v5 = vpop.f32.mrb[56].mxu0 }
 0x241   : > { %v1423_v7 = vadd.f32 %v1400_v5, %v1310_v50  ;;  %v4474_v18 = vpop.f32.mrb[57].mxu0 }
 0x242   : > { %v1403_v20 = vpop.f32.mrb[58].mxu0  ;;  %v4772_v18 = vld [vmem:[%s6271_s5 + $0x78] sm:$0xff]  }
 0x243   : > { %v1536_v21 = vadd.f32 %v1513_v45, %v1423_v7  ;;  %v1424_v24 = vadd.f32 %v1403_v20, %v1311_v57  ;;  %v4475_v26 = vpop.f32.mrb[59].mxu0  ;;  %v4771_v7 = vld [vmem:[%s6271_s5 + $0x70] sm:$0xff]  }
 0x244   : > { %v4774_v26 = vld [vmem:[%s6271_s5 + $0x88] sm:$0xff]  }
 0x245   : > { %v1549_v22 = vadd.f32 %v3952_v19, %v1536_v21  ;;  %v1537_v27 = vadd.f32 %v1516_v52, %v1424_v24 }
 0x247   : > { %v1555_v2 = vmax.f32 %v1549_v22, 0.0  ;;  %v1550_v28 = vadd.f32 %v3952_v19, %v1537_v27  ;;  %v4775_v27 = vld [vmem:[%s6271_s5 + $0x90] sm:$0xff]  }
 0x248   : > { %v1408_v25 = vpop.f32.mrb[60].mxu0 }
 0x249   : > { %1561 = vst.msk [vmem:[#allocation3] sm:$0xff] %vm633_vm1, %v1555_v2  ;;  %v1556_v30 = vmax.f32 %v1550_v28, 0.0  ;;  %v1425_v31 = vadd.f32 %v1408_v25, %v1312_v4  ;;  %v4478_v23 = vpop.f32.mrb[61].mxu0  ;;  %v4765_v4 = vld [vmem:[%s6271_s5 + $0x40] sm:$0xff]   ;;  %v4776_v2 = vld [vmem:[%s6271_s5 + $0x98] sm:$0xff]  }
 0x24a   : > { %v1411_v32 = vpop.f32.mrb[62].mxu0  ;;  %v4777_v28 = vld [vmem:[%s6271_s5 + $0xa0] sm:$0xff]   ;;  %v4778_v23 = vld [vmem:[%s6271_s5 + $0xa8] sm:$0xff]  }
 0x24b   : > { %1562 = vst.msk [vmem:[#allocation3 + $0x8] sm:$0xff] %vm633_vm1, %v1556_v30  ;;  %v1538_v33 = vadd.f32 %v1521_v59, %v1425_v31  ;;  %v1426_v34 = vadd.f32 %v1411_v32, %v1313_v6  ;;  %v4479_v35 = vpop.f32.mrb[63].mxu0 }
 0x24c   : > { %v4781_v35 = vld [vmem:[%s6271_s5 + $0xc0] sm:$0xff]  }
 0x24d   : > { %v1551_v36 = vadd.f32 %v3952_v19, %v1538_v33  ;;  %v1539_v37 = vadd.f32 %v1524_v63, %v1426_v34  ;;  %v4762_v63 = vld [vmem:[%s6271_s5 + $0x8] sm:$0xff]   ;;  %v4779_v33 = vld [vmem:[%s6271_s5 + $0xb0] sm:$0xff]   ;;  %v4780_v34 = vld [vmem:[%s6271_s5 + $0xb8] sm:$0xff]  }
 0x24f   : > { %v1557_v39 = vmax.f32 %v1551_v36, 0.0  ;;  %v1552_v40 = vadd.f32 %v3952_v19, %v1539_v37 }
 0x250   : > { %v1416_v41 = vpop.f32.mrb[64].mxu0  ;;  %v1568_v62 = vld [vmem:[#allocation3] sm:$0xff] }
 0x251   : > { %1563 = vst.msk [vmem:[#allocation3 + $0x10] sm:$0xff] %vm633_vm1, %v1557_v39  ;;  %v1558_v38 = vmax.f32 %v1552_v40, 0.0  ;;  %v1427_v42 = vadd.f32 %v1416_v41, %v1314_v17  ;;  %v4482_v44 = vpop.f32.mrb[65].mxu0  ;;  %v4782_v40 = vld [vmem:[%s6271_s5 + $0xc8] sm:$0xff]  }
 0x252   : > { %v1419_v45 = vpop.f32.mrb[66].mxu0  ;;  %v1582_v53 = vld [vmem:[#allocation3 + $0x1] sm:$0xff] }
 0x253   : > { %1564 = vst.msk [vmem:[#allocation3 + $0x18] sm:$0xff] %vm633_vm1, %v1558_v38  ;;  %v1540_v46 = vadd.f32 %v1529_v9, %v1427_v42  ;;  %v1428_v43 = vadd.f32 %v1419_v45, %v1315_v49  ;;  %v4483_v47 = vpop.f32.mrb[67].mxu0  ;;  %v1569_v59 = vld [vmem:[#allocation3 + $0x8] sm:$0xff]  ;;  %v4783_v38 = vld [vmem:[%s6271_s5 + $0xd0] sm:$0xff]   ;;  %v4784_v42 = vld [vmem:[%s6271_s5 + $0xd8] sm:$0xff]  }
 0x254   : > { %v1572_v0 = vpack.c.bf16 %v1569_v59, %v1568_v62  ;;  %v1754_v10 = vld [vmem:[#allocation3 + $0x2] sm:$0xff] }
 0x255   : > { %v1553_v51 = vadd.f32 %v3952_v19, %v1540_v46  ;;  %v1541_v52 = vadd.f32 %v1532_v12, %v1428_v43  ;;  %v4768_v12 = vld [vmem:[%s6271_s5 + $0x58] sm:$0xff]   ;;  %v4770_v49 = vld [vmem:[%s6271_s5 + $0x68] sm:$0xff]   ;;  %v4785_v44 = vld [vmem:[%s6271_s5 + $0xe0] sm:$0xff]  }
 0x256   : > { %v4786_v47 = vld [vmem:[%s6271_s5 + $0xe8] sm:$0xff]  }
 0x257   : > { %v1559_v54 = vmax.f32 %v1553_v51, 0.0  ;;  %v1554_v55 = vadd.f32 %v3952_v19, %v1541_v52  ;;  %v4773_v19 = vld [vmem:[%s6271_s5 + $0x80] sm:$0xff]   ;;  %v4787_v52 = vld [vmem:[%s6271_s5 + $0xf0] sm:$0xff]  }
 0x258   : > { %v5558_v50 = vld [vmem:[#allocation3 + $0x9] sm:$0xff] }
 0x259   : > { %1565 = vst.msk [vmem:[#allocation3 + $0x20] sm:$0xff] %vm633_vm1, %v1559_v54  ;;  %v1560_v57 = vmax.f32 %v1554_v55, 0.0  ;;  %v1586_v58 = vpack.c.bf16 %v5558_v50, %v1582_v53  ;;  %v5581_v6 = vld [vmem:[#allocation3 + $0xa] sm:$0xff]  ;;  %v4788_v54 = vld [vmem:[%s6271_s5 + $0xf8] sm:$0xff]   ;;  %v4789_v55 = vld [vmem:[%s6271_s5 + $0x100] sm:$0xff]  }
 0x25a   : > { %v5562_v60 = vld [vmem:[#allocation3 + $0x11] sm:$0xff]  ;;  %v1585_v56 = vld [vmem:[#allocation3 + $0x19] sm:$0xf]  ;;  %v1758_v13 = vpack.c.bf16 %v5581_v6, %v1754_v10  ;;  %v4807_v10 = vld [vmem:[%s6273_s7 + $0x44] ss:$8 sps:$4 sm:$0xff]  }
 0x25b   : > { %1567 = vst.msk [vmem:[#allocation3 + $0x28] sm:$0x3f] %vm1566_vm2, %v1560_v57  ;;  %4512 = vmatprep.mubr.msk.bf16.mxu0 %vm633_vm1, %v1586_v58  ;;  %v1587_v61 = vpack.c.bf16 %v1585_v56, %v5562_v60  ;;  %v5583_v8 = vld [vmem:[#allocation3 + $0x10] sm:$0xff]  ;;  %v1757_v16 = vld [vmem:[#allocation3 + $0x1a] sm:$0xf]  ;;  %v1952_v22 = vpack.c.bf16 %v5562_v60, %v5558_v50  ;;  %v4790_v58 = vld [vmem:[%s6271_s5 + $0x108] sm:$0xff]  }
 0x25c   : > { %v5601_v15 = vld [vmem:[#allocation3 + $0x12] sm:$0xff]  ;;  %v1855_v5 = vpack.c.bf16 %v5583_v8, %v1569_v59 }
 0x25d   : > { %4513 = vmatmul.mubr.msk.bf16.vlgmr.msra.gmra.mrb[68].mxu0 %vm633_vm1, %v1587_v61  ;;  %v1759_v17 = vpack.c.bf16 %v1757_v16, %v5601_v15  ;;  %v1853_v21 = vld [vmem:[#allocation3 + $0x18] sm:$0xff]  ;;  %v2049_v32 = vpack.c.bf16 %v5601_v15, %v5581_v6  ;;  %v4799_v6 = vld [vmem:[%s6273_s7 + $0x20] ss:$8 sps:$4 sm:$0xff]  }
 0x25e   : > { %4517 = vmatpush3.bf16.msra.mxu0 %v5548_v29  ;;  %4524 = vmatprep.mubr.msk.bf16.mxu0 %vm633_vm1, %v1572_v0  ;;  %v1571_v29 = vld [vmem:[#allocation3 + $0x18] sm:$0xf]  ;;  %v2146_v41 = vpack.c.bf16 %v1853_v21, %v5583_v8  ;;  %v4793_v0 = vld [vmem:[%s6273_s7] ss:$8 sps:$4 sm:$0xff]  }
 0x25f   : > { %4518 = vmatprep.subr.bf16.mxu0 %v4762_v63  ;;  %v1573_v9 = vpack.c.bf16 %v1571_v29, %v5583_v8  ;;  %v4792_v56 = vld [vmem:[%s6271_s5 + $0x118] sm:$0xff]   ;;  %v4801_v29 = vld [vmem:[%s6273_s7 + $0x24] ss:$8 sps:$4 sm:$0xff]  }
 0x260   : > { %v1854_v20 = vld [vmem:[#allocation3 + $0x20] sm:$0xf]  ;;  %v4804_v8 = vld [vmem:[%s6273_s7 + $0x34] ss:$8 sps:$4 sm:$0xff]   ;;  %v4814_v16 = vld [vmem:[%s6273_s7 + $0x70] ss:$8 sps:$4 sm:$0xff]  }
 0x261   : > { %v1856_v24 = vpack.c.bf16 %v1854_v20, %v1853_v21  ;;  %v1950_v25 = vld [vmem:[#allocation3 + $0x19] sm:$0xff]  ;;  %v1951_v30 = vld [vmem:[#allocation3 + $0x21] sm:$0xf] }
 0x262   : > { %4519 = vmatpush3.bf16.msra.mxu0 %v4762_v63  ;;  %v1953_v31 = vpack.c.bf16 %v1951_v30, %v1950_v25  ;;  %v2047_v36 = vld [vmem:[#allocation3 + $0x1a] sm:$0xff]  ;;  %v2048_v37 = vld [vmem:[#allocation3 + $0x22] sm:$0xf]  ;;  %v2145_v45 = vld [vmem:[#allocation3 + $0x28] sm:$0xf]  ;;  %v2243_v51 = vpack.c.bf16 %v1950_v25, %v5562_v60 }
 0x263   : > { %4520 = vmatprep.subr.bf16.mxu0 %v4763_v1  ;;  %v2050_v39 = vpack.c.bf16 %v2048_v37, %v2047_v36  ;;  %v2144_v46 = vld [vmem:[#allocation3 + $0x20] sm:$0xff]  ;;  %v2242_v50 = vld [vmem:[#allocation3 + $0x29] sm:$0xf]  ;;  %v2340_v59 = vpack.c.bf16 %v2047_v36, %v5601_v15  ;;  %v4791_v60 = vld [vmem:[%s6271_s5 + $0x110] sm:$0xff]  }
 0x264   : > { %v2147_v43 = vpack.c.bf16 %v2145_v45, %v2144_v46  ;;  %v2241_v53 = vld [vmem:[#allocation3 + $0x21] sm:$0xff]  ;;  %v2339_v62 = vld [vmem:[#allocation3 + $0x2a] sm:$0xf]  ;;  %v4816_v15 = vld [vmem:[%s6273_s7 + $0x74] ss:$8 sps:$4 sm:$0xff]  }
 0x265   : > { %v2244_v57 = vpack.c.bf16 %v2242_v50, %v2241_v53  ;;  %v2338_v61 = vld [vmem:[#allocation3 + $0x22] sm:$0xff] }
 0x266   : > { %4521 = vmatpush3.bf16.msra.mxu0 %v4763_v1  ;;  %v2341_v63 = vpack.c.bf16 %v2339_v62, %v2338_v61  ;;  %v4795_v1 = vld [vmem:[%s6273_s7 + $0x4] ss:$8 sps:$4 sm:$0xff]  }
 0x267   : > { %4522 = vmatprep.subr.bf16.mxu0 %v4764_v3  ;;  %3466 = vmatprep.subr.bf16.mxu1 %v4795_v1  ;;  %v4834_v1 = vld [vmem:[%s6273_s7 + $0xd4] ss:$8 sps:$4 sm:$0xff]  }
 0x268   : > { %3467 = vmatpush1.bf16.msra.mxu1 %v4793_v0  ;;  %v4832_v0 = vld [vmem:[%s6273_s7 + $0xd0] ss:$8 sps:$4 sm:$0xff]  }
 0x26a   : > { %4523 = vmatpush3.bf16.msra.mxu0 %v4764_v3  ;;  %v4798_v3 = vld [vmem:[%s6273_s7 + $0x14] ss:$8 sps:$4 sm:$0xff]  }
 0x26b   : > { %4528 = vmatprep.subr.bf16.mxu0 %v4765_v4  ;;  %3468 = vmatprep.subr.bf16.mxu1 %v4798_v3 }
 0x26d   : > { %4525 = vmatmul.mubr.msk.bf16.vlgmr.msra.gmra.mrb[68].mxu0 %vm633_vm1, %v1573_v9  ;;  %v4802_v9 = vld [vmem:[%s6273_s7 + $0x30] ss:$8 sps:$4 sm:$0xff]  }
 0x26e   : > { %4529 = vmatpush3.bf16.msra.mxu0 %v4765_v4  ;;  %4536 = vmatprep.mubr.msk.bf16.mxu0 %vm633_vm1, %v1758_v13  ;;  %v4796_v4 = vld [vmem:[%s6273_s7 + $0x10] ss:$8 sps:$4 sm:$0xff]   ;;  %v4810_v13 = vld [vmem:[%s6273_s7 + $0x54] ss:$8 sps:$4 sm:$0xff]  }
 0x26f   : > { %4530 = vmatprep.subr.bf16.mxu0 %v4766_v11  ;;  %3469 = vmatpush1.bf16.msra.mxu1 %v4796_v4  ;;  %v4837_v4 = vld [vmem:[%s6273_s7 + $0xe4] ss:$8 sps:$4 sm:$0xff]  }
 0x270   : > { %3470 = vmatprep.subr.bf16.mxu1 %v4801_v29 }
 0x272   : > { %4531 = vmatpush3.bf16.msra.mxu0 %v4766_v11  ;;  %v4805_v11 = vld [vmem:[%s6273_s7 + $0x40] ss:$8 sps:$4 sm:$0xff]  }
 0x273   : > { %4532 = vmatprep.subr.bf16.mxu0 %v4767_v48  ;;  %3471 = vmatpush1.bf16.msra.mxu1 %v4799_v6 }
 0x274   : > { %3472 = vmatprep.subr.bf16.mxu1 %v4804_v8 }
 0x276   : > { %4533 = vmatpush3.bf16.msra.mxu0 %v4767_v48  ;;  %v4808_v48 = vld [vmem:[%s6273_s7 + $0x50] ss:$8 sps:$4 sm:$0xff]  }
 0x277   : > { %4534 = vmatprep.subr.bf16.mxu0 %v4768_v12  ;;  %3473 = vmatpush1.bf16.msra.mxu1 %v4802_v9  ;;  %v4835_v9 = vld [vmem:[%s6273_s7 + $0xe0] ss:$8 sps:$4 sm:$0xff]  }
 0x278   : > { %3474 = vmatprep.subr.bf16.mxu1 %v4807_v10  ;;  %v4840_v10 = vld [vmem:[%s6273_s7 + $0xf4] ss:$8 sps:$4 sm:$0xff]  }
 0x27a   : > { %4535 = vmatpush3.bf16.msra.mxu0 %v4768_v12  ;;  %v4813_v12 = vld [vmem:[%s6273_s7 + $0x64] ss:$8 sps:$4 sm:$0xff]  }
 0x27b   : > { %4540 = vmatprep.subr.bf16.mxu0 %v4769_v14  ;;  %3475 = vmatpush1.bf16.msra.mxu1 %v4805_v11 }
 0x27c   : > { %3476 = vmatprep.subr.bf16.mxu1 %v4810_v13 }
 0x27d   : > { %4537 = vmatmul.mubr.msk.bf16.vlgmr.msra.gmra.mrb[68].mxu0 %vm633_vm1, %v1759_v17  ;;  %v4819_v17 = vld [vmem:[%s6273_s7 + $0x84] ss:$8 sps:$4 sm:$0xff]  }
 0x27e   : > { %4541 = vmatpush3.bf16.msra.mxu0 %v4769_v14  ;;  %4548 = vmatprep.mubr.msk.bf16.mxu0 %vm633_vm1, %v1855_v5  ;;  %v4811_v14 = vld [vmem:[%s6273_s7 + $0x60] ss:$8 sps:$4 sm:$0xff]   ;;  %v4822_v5 = vld [vmem:[%s6273_s7 + $0x94] ss:$8 sps:$4 sm:$0xff]  }
 0x27f   : > { %4542 = vmatprep.subr.bf16.mxu0 %v4770_v49  ;;  %3477 = vmatpush1.bf16.msra.mxu1 %v4808_v48  ;;  %v4838_v48 = vld [vmem:[%s6273_s7 + $0xf0] ss:$8 sps:$4 sm:$0xff]  }
 0x280   : > { %3478 = vmatprep.subr.bf16.mxu1 %v4813_v12  ;;  %v4843_v12 = vld [vmem:[%s6273_s7 + $0x104] ss:$8 sps:$4 sm:$0xff]  }
 0x282   : > { %4543 = vmatpush3.bf16.msra.mxu0 %v4770_v49  ;;  %v4817_v49 = vld [vmem:[%s6273_s7 + $0x80] ss:$8 sps:$4 sm:$0xff]  }
 0x283   : > { %4544 = vmatprep.subr.bf16.mxu0 %v4771_v7  ;;  %3479 = vmatpush1.bf16.msra.mxu1 %v4811_v14  ;;  %v4897_v14 = vld [vmem:[%s6273_s7 + $0x224] ss:$8 sps:$4 sm:$0xff]  }
 0x284   : > { %3480 = vmatprep.subr.bf16.mxu1 %v4816_v15 }
 0x286   : > { %4545 = vmatpush3.bf16.msra.mxu0 %v4771_v7  ;;  %v4820_v7 = vld [vmem:[%s6273_s7 + $0x90] ss:$8 sps:$4 sm:$0xff]  }
 0x287   : > { %4546 = vmatprep.subr.bf16.mxu0 %v4772_v18  ;;  %3481 = vmatpush1.bf16.msra.mxu1 %v4814_v16 }
 0x288   : > { %3482 = vmatprep.subr.bf16.mxu1 %v4819_v17 }
 0x28a   : > { %4547 = vmatpush3.bf16.msra.mxu0 %v4772_v18  ;;  %v4007_v18 = vld [vmem:[%s6272_s6] ss:$0 sm:$0xff] }
 0x28b   : > { %4552 = vmatprep.subr.bf16.mxu0 %v4773_v19  ;;  %3483 = vmatpush1.bf16.msra.mxu1 %v4817_v49 }
 0x28c   : > { %3484 = vmatprep.subr.bf16.mxu1 %v4822_v5 }
 0x28d   : > { %4549 = vmatmul.mubr.msk.bf16.vlgmr.msra.gmra.mrb[68].mxu0 %vm633_vm1, %v1856_v24  ;;  %v2454_v24 = vlaneseq }
 0x28e   : > { %4553 = vmatpush3.bf16.msra.mxu0 %v4773_v19  ;;  %4560 = vmatprep.mubr.msk.bf16.mxu0 %vm633_vm1, %v1952_v22 }
 0x28f   : > { %4554 = vmatprep.subr.bf16.mxu0 %v4774_v26  ;;  %3485 = vmatpush1.bf16.msra.mxu1 %v4820_v7  ;;  %v5765_v36 = vshrl.u32 %v2454_v24, 7  ;;  %vm5777_vm4 = vcmp.lt.s32.totalorder %v2454_v24, 64  ;;  %vm2478_vm5 = vcmp.ge.s32.totalorder %v2454_v24, 64  ;;  %vm2479_vm6 = vcmp.lt.s32.totalorder %v2454_v24, 128 }
 0x290   : > { %vm5834_vm7 = vmand %vm2478_vm5, %vm2479_vm6 }
 0x291   : > { %v2652_v24 = vsub.s32 3, %v5765_v36 }
 0x292   : > { %4555 = vmatpush3.bf16.msra.mxu0 %v4774_v26  ;;  %v5067_v26 = vmov 1966171168  }
 0x293   : > { %4556 = vmatprep.subr.bf16.mxu0 %v4775_v27  ;;  %v2469_v22 = vunpack.c.l.s4 %v5067_v26 }
 0x296   : > { %4557 = vmatpush3.bf16.msra.mxu0 %v4775_v27 }
 0x297   : > { %4558 = vmatprep.subr.bf16.mxu0 %v4776_v2 }
 0x29a   : > { %4559 = vmatpush3.bf16.msra.mxu0 %v4776_v2 }
 0x29b   : > { %4564 = vmatprep.subr.bf16.mxu0 %v4777_v28 }
 0x29d   : > { %4561 = vmatmul.mubr.msk.bf16.vlgmr.msra.gmra.mrb[68].mxu0 %vm633_vm1, %v1953_v31  ;;  %v4823_v31 = vld [vmem:[%s6273_s7 + $0xa0] ss:$8 sps:$4 sm:$0xff]  }
 0x29e   : > { %4565 = vmatpush3.bf16.msra.mxu0 %v4777_v28  ;;  %4572 = vmatprep.mubr.msk.bf16.mxu0 %vm633_vm1, %v2049_v32 }
 0x29f   : > { %4566 = vmatprep.subr.bf16.mxu0 %v4778_v23 }
 0x2a2   : > { %4567 = vmatpush3.bf16.msra.mxu0 %v4778_v23  ;;  %v4825_v23 = vld [vmem:[%s6273_s7 + $0xa4] ss:$8 sps:$4 sm:$0xff]  }
 0x2a3   : > { %4568 = vmatprep.subr.bf16.mxu0 %v4779_v33  ;;  %3486 = vmatprep.subr.bf16.mxu1 %v4825_v23 }
 0x2a4   : > { %3487 = vmatpush1.bf16.msra.mxu1 %v4823_v31  ;;  %v4846_v31 = vld [vmem:[%s6273_s7 + $0x114] ss:$8 sps:$4 sm:$0xff]  }
 0x2a6   : > { %4569 = vmatpush3.bf16.msra.mxu0 %v4779_v33 }
 0x2a7   : > { %4570 = vmatprep.subr.bf16.mxu0 %v4780_v34 }
 0x2aa   : > { %4571 = vmatpush3.bf16.msra.mxu0 %v4780_v34 }
 0x2ab   : > { %4576 = vmatprep.subr.bf16.mxu0 %v4781_v35 }
 0x2ad   : > { %4573 = vmatmul.mubr.msk.bf16.vlgmr.msra.gmra.mrb[68].mxu0 %vm633_vm1, %v2050_v39  ;;  %v4826_v39 = vld [vmem:[%s6273_s7 + $0xb0] ss:$8 sps:$4 sm:$0xff]  }
 0x2ae   : > { %4577 = vmatpush3.bf16.msra.mxu0 %v4781_v35  ;;  %4584 = vmatprep.mubr.msk.bf16.mxu0 %vm633_vm1, %v2146_v41  ;;  %v2470_v35 = vunpack.c.0.s8 %v2469_v22 }
 0x2af   : > { %4578 = vmatprep.subr.bf16.mxu0 %v4782_v40 }
 0x2b0   : > { %v2473_v41 = vsub.s32 %v2470_v35, %v5765_v36  ;;  %v4852_v35 = vld [vmem:[%s6273_s7 + $0x134] ss:$8 sps:$4 sm:$0xff]  }
 0x2b2   : > { %4579 = vmatpush3.bf16.msra.mxu0 %v4782_v40  ;;  %v4828_v40 = vld [vmem:[%s6273_s7 + $0xb4] ss:$8 sps:$4 sm:$0xff]  }
 0x2b3   : > { %4580 = vmatprep.subr.bf16.mxu0 %v4783_v38  ;;  %3488 = vmatprep.subr.bf16.mxu1 %v4828_v40  ;;  %v4853_v40 = vld [vmem:[%s6273_s7 + $0x140] ss:$8 sps:$4 sm:$0xff]  }
 0x2b4   : > { %3489 = vmatpush1.bf16.msra.mxu1 %v4826_v39  ;;  %v4855_v39 = vld [vmem:[%s6273_s7 + $0x144] ss:$8 sps:$4 sm:$0xff]  }
 0x2b6   : > { %4581 = vmatpush3.bf16.msra.mxu0 %v4783_v38  ;;  %v4856_v38 = vld [vmem:[%s6273_s7 + $0x150] ss:$8 sps:$4 sm:$0xff]  }
 0x2b7   : > { %4582 = vmatprep.subr.bf16.mxu0 %v4784_v42 }
 0x2ba   : > { %4583 = vmatpush3.bf16.msra.mxu0 %v4784_v42  ;;  %v4829_v42 = vld [vmem:[%s6273_s7 + $0xc0] ss:$8 sps:$4 sm:$0xff]  }
 0x2bb   : > { %4588 = vmatprep.subr.bf16.mxu0 %v4785_v44 }
 0x2bd   : > { %4585 = vmatmul.mubr.msk.bf16.vlgmr.msra.gmra.mrb[68].mxu0 %vm633_vm1, %v2147_v43 }
 0x2be   : > { %4589 = vmatpush3.bf16.msra.mxu0 %v4785_v44  ;;  %4596 = vmatprep.mubr.msk.bf16.mxu0 %vm633_vm1, %v2243_v51  ;;  %v4831_v44 = vld [vmem:[%s6273_s7 + $0xc4] ss:$8 sps:$4 sm:$0xff]  }
 0x2bf   : > { %4590 = vmatprep.subr.bf16.mxu0 %v4786_v47  ;;  %3490 = vmatprep.subr.bf16.mxu1 %v4831_v44  ;;  %v4859_v44 = vld [vmem:[%s6273_s7 + $0x160] ss:$8 sps:$4 sm:$0xff]  }
 0x2c0   : > { %3491 = vmatpush1.bf16.msra.mxu1 %v4829_v42  ;;  %v4861_v42 = vld [vmem:[%s6273_s7 + $0x164] ss:$8 sps:$4 sm:$0xff]  }
 0x2c1   : > { %3492 = vmatprep.subr.bf16.mxu1 %v4834_v1  ;;  %v4886_v1 = vld [vmem:[%s6273_s7 + $0x1f0] ss:$8 sps:$4 sm:$0xff]  }
 0x2c2   : > { %4591 = vmatpush3.bf16.msra.mxu0 %v4786_v47 }
 0x2c3   : > { %4592 = vmatprep.subr.bf16.mxu0 %v4787_v52 }
 0x2c4   : > { %3493 = vmatpush1.bf16.msra.mxu1 %v4832_v0  ;;  %v2660_v0 = vsub.s32 5, %v5765_v36 }
 0x2c5   : > { %3494 = vmatprep.subr.bf16.mxu1 %v4837_v4  ;;  %v4891_v4 = vld [vmem:[%s6273_s7 + $0x204] ss:$8 sps:$4 sm:$0xff]  }
 0x2c6   : > { %4593 = vmatpush3.bf16.msra.mxu0 %v4787_v52 }
 0x2c7   : > { %4594 = vmatprep.subr.bf16.mxu0 %v4788_v54 }
 0x2c8   : > { %3495 = vmatpush1.bf16.msra.mxu1 %v4835_v9  ;;  %v4894_v9 = vld [vmem:[%s6273_s7 + $0x214] ss:$8 sps:$4 sm:$0xff]  }
 0x2c9   : > { %3496 = vmatprep.subr.bf16.mxu1 %v4840_v10 }
 0x2ca   : > { %4595 = vmatpush3.bf16.msra.mxu0 %v4788_v54 }
 0x2cb   : > { %4600 = vmatprep.subr.bf16.mxu0 %v4789_v55 }
 0x2cc   : > { %3497 = vmatpush1.bf16.msra.mxu1 %v4838_v48  ;;  %v4987_v48 = vld [vmem:[%s6275_s9 + $0x48] sm:$0xff]  }
 0x2cd   : > { %4597 = vmatmul.mubr.msk.bf16.vlgmr.msra.gmra.mrb[68].mxu0 %vm633_vm1, %v2244_v57  ;;  %3507 = vmatprep.subr.bf16.mxu1 %v4843_v12  ;;  %v4892_v12 = vld [vmem:[%s6273_s7 + $0x210] ss:$8 sps:$4 sm:$0xff]  }
 0x2ce   : > { %4601 = vmatpush3.bf16.msra.mxu0 %v4789_v55  ;;  %4608 = vmatprep.mubr.msk.bf16.mxu0 %vm633_vm1, %v2340_v59 }
 0x2cf   : > { %4602 = vmatprep.subr.bf16.mxu0 %v4790_v58 }
 0x2d2   : > { %4603 = vmatpush3.bf16.msra.mxu0 %v4790_v58 }
 0x2d3   : > { %4604 = vmatprep.subr.bf16.mxu0 %v4791_v60 }
 0x2d6   : > { %4605 = vmatpush3.bf16.msra.mxu0 %v4791_v60 }
 0x2d7   : > { %4606 = vmatprep.subr.bf16.mxu0 %v4792_v56 }
 0x2da   : > { %4607 = vmatpush3.bf16.msra.mxu0 %v4792_v56 }
 0x2dd   : > { %4609 = vmatmul.mubr.msk.bf16.vlgmr.msra.gmra.mrb[68].mxu0 %vm633_vm1, %v2341_v63 }
 0x3b0   : > { %v4610_v19 = vpop.f32.mrb[68].mxu0 }
 0x3b1   : > { %v2442_v20 = vadd.f32 %v4610_v19, %v4007_v18  ;;  %v2414_v21 = vpop.f32.mrb[69].mxu0 }
 0x3b2   : > { %v2440_v27 = vadd.f32 %v4007_v18, %v2414_v21  ;;  %v4611_v2 = vpop.f32.mrb[70].mxu0  ;;  %v2640_v21 = vsub.s32 0, %v5765_v36 }
 0x3b3   : > { %v2446_v28 = vmax.f32 %v2442_v20, 0.0  ;;  %v2443_v25 = vadd.f32 %v4611_v2, %v4007_v18  ;;  %v2417_v30 = vpop.f32.mrb[71].mxu0  ;;  %v2644_v20 = vsub.s32 1, %v5765_v36 }
 0x3b4   : > { %v2444_v32 = vmax.f32 %v2440_v27, 0.0  ;;  %v2441_v33 = vadd.f32 %v4007_v18, %v2417_v30 }
 0x3b5   : > { %2450 = vst.msk [vmem:[#allocation4 + $0x10] sm:$0xff] %vm633_vm1, %v2446_v28  ;;  %v2447_v34 = vmax.f32 %v2443_v25, 0.0  ;;  %v4841_v25 = vld [vmem:[%s6273_s7 + $0x100] ss:$8 sps:$4 sm:$0xff]  }
 0x3b6   : > { %2448 = vst.msk [vmem:[#allocation4] sm:$0xff] %vm633_vm1, %v2444_v32  ;;  %v2445_v37 = vmax.f32 %v2441_v33, 0.0  ;;  %v4844_v32 = vld [vmem:[%s6273_s7 + $0x110] ss:$8 sps:$4 sm:$0xff]   ;;  %v4849_v33 = vld [vmem:[%s6273_s7 + $0x124] ss:$8 sps:$4 sm:$0xff]  }
 0x3b7   : > { %2452 = vst.msk [vmem:[#allocation4 + $0x18] sm:$0xf] %vm2451_vm3, %v2447_v34  ;;  %v4847_v34 = vld [vmem:[%s6273_s7 + $0x120] ss:$8 sps:$4 sm:$0xff]  }
 0x3b8   : > { %2449 = vst.msk [vmem:[#allocation4 + $0x8] sm:$0xff] %vm633_vm1, %v2445_v37  ;;  %v4850_v37 = vld [vmem:[%s6273_s7 + $0x130] ss:$8 sps:$4 sm:$0xff]  }
 0x3bc   : > { %v4013_v45 = vld.sshfl [vmem:[#allocation4 + $0x13] sm:$0x1 pattern:$0x75316420]  ;;  %v2570_v46 = vld [vmem:[#allocation4 + $0x12] sm:$0x1] }
 0x3bd   : > { %v2587_v43 = vrot.slane %v4013_v45, %v2473_v41  ;;  %v4012_v47 = vld.sshfl [vmem:[#allocation4 + $0x11] sm:$0x1 pattern:$0x75316420]  ;;  %2571 = vst.msk [vmem:[#allocation5 + $0x5] sm:$0x1] %vm5777_vm4, %v2570_v46 }
 0x3be   : > { %v2548_v51 = vld [vmem:[#allocation4 + $0x10] sm:$0x1]  ;;  %v2565_v52 = vrot.slane %v4012_v47, %v2473_v41  ;;  %v4008_v54 = vld.sshfl [vmem:[#allocation4 + $0x1] sm:$0x1 pattern:$0x75316420] }
 0x3bf   : > { %2549 = vst.msk [vmem:[#allocation5 + $0x4] sm:$0x1] %vm5777_vm4, %v2548_v51  ;;  %v2453_v55 = vld [vmem:[#allocation4] sm:$0x1]  ;;  %2588 = vrot.lane.b32.xlu1 %v2587_v43, %s5068_s16  ;;  %v2504_v50 = vld [vmem:[#allocation4 + $0x8] sm:$0x1]  ;;  %v2474_v60 = vrot.slane %v4008_v54, %v2473_v41 }
 0x3c0   : > { %v4010_v53 = vld.sshfl [vmem:[#allocation4 + $0x9] sm:$0x1 pattern:$0x75316420]  ;;  %2458 = vst.msk [vmem:[#allocation5] sm:$0x1] %vm5777_vm4, %v2453_v55  ;;  %2566 = vrot.lane.b32.xlu0 %v2565_v52, %s5068_s16 }
 0x3c1   : > { %v2521_v57 = vrot.slane %v4010_v53, %v2473_v41  ;;  %2505 = vst.msk [vmem:[#allocation5 + $0x2] sm:$0x1] %vm5777_vm4, %v2504_v50  ;;  %v2482_v58 = vld [vmem:[#allocation4 + $0x2] sm:$0x1]  ;;  %v2526_v59 = vld [vmem:[#allocation4 + $0xa] sm:$0x1] }
 0x3c2   : > { %2483 = vst.msk [vmem:[#allocation5 + $0x1] sm:$0x1] %vm5777_vm4, %v2482_v58  ;;  %v4011_v56 = vld.sshfl [vmem:[#allocation4 + $0xb] sm:$0x1 pattern:$0x75316420] }
 0x3c3   : > { %2527 = vst.msk [vmem:[#allocation5 + $0x3] sm:$0x1] %vm5777_vm4, %v2526_v59  ;;  %v2592_v61 = vld [vmem:[#allocation4 + $0x18] sm:$0x1]  ;;  %2522 = vrot.lane.b32.xlu1 %v2521_v57, %s5068_s16  ;;  %v2614_v63 = vld [vmem:[#allocation4 + $0x1a] sm:$0x1]  ;;  %v2543_v3 = vrot.slane %v4011_v56, %v2473_v41 }
 0x3c4   : > { %v4009_v62 = vld.sshfl [vmem:[#allocation4 + $0x3] sm:$0x1 pattern:$0x75316420]  ;;  %2593 = vst.msk [vmem:[#allocation5 + $0x6] sm:$0x1] %vm5777_vm4, %v2592_v61  ;;  %2475 = vrot.lane.b32.xlu0 %v2474_v60, %s5068_s16 }
 0x3c5   : > { %2615 = vst.msk [vmem:[#allocation5 + $0x7] sm:$0x1] %vm5777_vm4, %v2614_v63  ;;  %v2499_v29 = vrot.slane %v4009_v62, %v2473_v41  ;;  %v4015_v6 = vld.sshfl [vmem:[#allocation4 + $0x1b] sm:$0x1 pattern:$0x75316420] }
 0x3c6   : > { %v4014_v8 = vld.sshfl [vmem:[#allocation4 + $0x19] sm:$0x1 pattern:$0x75316420]  ;;  %v2631_v11 = vrot.slane %v4015_v6, %v2473_v41  ;;  %v4864_v45 = vld [vmem:[%s6273_s7 + $0x174] ss:$8 sps:$4 sm:$0xff]  }
 0x3c7   : > { %2544 = vrot.lane.b32.xlu1 %v2543_v3, %s5068_s16  ;;  %v2609_v13 = vrot.slane %v4014_v8, %v2473_v41  ;;  %v4858_v41 = vld [vmem:[%s6273_s7 + $0x154] ss:$8 sps:$4 sm:$0xff]   ;;  %v4862_v46 = vld [vmem:[%s6273_s7 + $0x170] ss:$8 sps:$4 sm:$0xff]   ;;  %v4867_v43 = vld [vmem:[%s6273_s7 + $0x184] ss:$8 sps:$4 sm:$0xff]  }
 0x3c8   : > { %2500 = vrot.lane.b32.xlu0 %v2499_v29, %s5068_s16  ;;  %v4865_v47 = vld [vmem:[%s6273_s7 + $0x180] ss:$8 sps:$4 sm:$0xff]   ;;  %v4870_v51 = vld [vmem:[%s6273_s7 + $0x194] ss:$8 sps:$4 sm:$0xff]   ;;  %v4868_v52 = vld [vmem:[%s6273_s7 + $0x190] ss:$8 sps:$4 sm:$0xff]  }
 0x3c9   : > { %v4873_v54 = vld [vmem:[%s6273_s7 + $0x1a4] ss:$8 sps:$4 sm:$0xff]   ;;  %v4871_v55 = vld [vmem:[%s6273_s7 + $0x1a0] ss:$8 sps:$4 sm:$0xff]   ;;  %v4876_v53 = vld [vmem:[%s6273_s7 + $0x1b4] ss:$8 sps:$4 sm:$0xff]  }
 0x3ca   : > { %v4874_v50 = vld [vmem:[%s6273_s7 + $0x1b0] ss:$8 sps:$4 sm:$0xff]   ;;  %v4879_v57 = vld [vmem:[%s6273_s7 + $0x1c4] ss:$8 sps:$4 sm:$0xff]   ;;  %v4877_v58 = vld [vmem:[%s6273_s7 + $0x1c0] ss:$8 sps:$4 sm:$0xff]  }
 0x3cb   : > { %2632 = vrot.lane.b32.xlu1 %v2631_v11, %s5068_s16  ;;  %v4882_v59 = vld [vmem:[%s6273_s7 + $0x1d4] ss:$8 sps:$4 sm:$0xff]   ;;  %v4880_v60 = vld [vmem:[%s6273_s7 + $0x1d0] ss:$8 sps:$4 sm:$0xff]   ;;  %v4885_v56 = vld [vmem:[%s6273_s7 + $0x1e4] ss:$8 sps:$4 sm:$0xff]  }
 0x3cc   : > { %2610 = vrot.lane.b32.xlu0 %v2609_v13, %s5068_s16  ;;  %v4883_v61 = vld [vmem:[%s6273_s7 + $0x1e0] ss:$8 sps:$4 sm:$0xff]   ;;  %v4888_v62 = vld [vmem:[%s6273_s7 + $0x1f4] ss:$8 sps:$4 sm:$0xff]   ;;  %v2648_v63 = vsub.s32 2, %v5765_v36 }
 0x3cd   : > { %v4889_v6 = vld [vmem:[%s6273_s7 + $0x200] ss:$8 sps:$4 sm:$0xff]  }
 0x3ce   : > { %v4985_v11 = vld [vmem:[%s6275_s9 + $0x40] sm:$0xff]  }
 0x3cf   : > { %v4986_v13 = vld [vmem:[%s6275_s9] sm:$0xff]   ;;  %4290 = vmatprep.subr.bf16.mxu0 %v4985_v11 }
 0x3d0   : > { %4291 = vmatpush3.bf16.msra.mxu0 %v4986_v13  ;;  %v4955_v11 = vld [vmem:[%s6273_s7 + $0x360] ss:$8 sps:$4 sm:$0xff]   ;;  %v4960_v13 = vld [vmem:[%s6273_s7 + $0x374] ss:$8 sps:$4 sm:$0xff]  }
 0x3d1   : > { %4292 = vmatprep.subr.bf16.mxu0 %v4987_v48  ;;  %v4958_v48 = vld [vmem:[%s6273_s7 + $0x370] ss:$8 sps:$4 sm:$0xff]  }
 0x431   : > { %v2589_v15 = vpop.permute.xlu1 %2588 }
 0x432   : > { %2591 = vst.msk [vmem:[#allocation5 + $0x5] sm:$0x1] %vm5834_vm7, %v2589_v15  ;;  %v2567_v16 = vpop.permute.xlu0 %2566  ;;  %v4988_v15 = vld [vmem:[%s6275_s9 + $0x8] sm:$0xff]  }
 0x433   : > { %2569 = vst.msk [vmem:[#allocation5 + $0x4] sm:$0x1] %vm5834_vm7, %v2567_v16  ;;  %v4989_v16 = vld [vmem:[%s6275_s9 + $0x50] sm:$0xff]   ;;  %4293 = vmatpush3.bf16.msra.mxu0 %v4988_v15 }
 0x434   : > { %4294 = vmatprep.subr.bf16.mxu0 %v4989_v16  ;;  %v4966_v15 = vld [vmem:[%s6273_s7 + $0x394] ss:$8 sps:$4 sm:$0xff]   ;;  %v4964_v16 = vld [vmem:[%s6273_s7 + $0x390] ss:$8 sps:$4 sm:$0xff]  }
 0x435   : > { %v2523_v17 = vpop.permute.xlu1 %2522 }
 0x436   : > { %v2476_v49 = vpop.permute.xlu0 %2475  ;;  %2525 = vst.msk [vmem:[#allocation5 + $0x2] sm:$0x1] %vm5834_vm7, %v2523_v17  ;;  %v4895_v17 = vld [vmem:[%s6273_s7 + $0x220] ss:$8 sps:$4 sm:$0xff]  }
 0x437   : > { %2481 = vst.msk [vmem:[#allocation5] sm:$0x1] %vm5834_vm7, %v2476_v49  ;;  %v4900_v49 = vld [vmem:[%s6273_s7 + $0x234] ss:$8 sps:$4 sm:$0xff]  }
 0x439   : > { %v2545_v5 = vpop.permute.xlu1 %2544 }
 0x43a   : > { %v2501_v7 = vpop.permute.xlu0 %2500  ;;  %2547 = vst.msk [vmem:[#allocation5 + $0x3] sm:$0x1] %vm5834_vm7, %v2545_v5  ;;  %v4990_v5 = vld [vmem:[%s6275_s9 + $0x10] sm:$0xff]  }
 0x43b   : > { %2503 = vst.msk [vmem:[#allocation5 + $0x1] sm:$0x1] %vm5834_vm7, %v2501_v7  ;;  %v4991_v7 = vld [vmem:[%s6275_s9 + $0x58] sm:$0xff]   ;;  %4295 = vmatpush3.bf16.msra.mxu0 %v4990_v5 }
 0x43c   : > { %4296 = vmatprep.subr.bf16.mxu0 %v4991_v7  ;;  %v4972_v5 = vld [vmem:[%s6273_s7 + $0x3b4] ss:$8 sps:$4 sm:$0xff]   ;;  %v4970_v7 = vld [vmem:[%s6273_s7 + $0x3b0] ss:$8 sps:$4 sm:$0xff]  }
 0x43d   : > { %v2633_v18 = vpop.permute.xlu1 %2632 }
 0x43e   : > { %v2611_v19 = vpop.permute.xlu0 %2610  ;;  %2635 = vst.msk [vmem:[#allocation5 + $0x7] sm:$0x1] %vm5834_vm7, %v2633_v18  ;;  %v4898_v18 = vld [vmem:[%s6273_s7 + $0x230] ss:$8 sps:$4 sm:$0xff]  }
 0x43f   : > { %2613 = vst.msk [vmem:[#allocation5 + $0x6] sm:$0x1] %vm5834_vm7, %v2611_v19  ;;  %v4903_v19 = vld [vmem:[%s6273_s7 + $0x244] ss:$8 sps:$4 sm:$0xff]  }
 0x446   : > { %v5857_v26 = vld [vmem:[#allocation5] sm:$0xff] }
 0x447   : > { %v2645_v22 = vrot.slane %v5857_v26, %v2644_v20  ;;  %v2641_v27 = vrot.slane %v5857_v26, %v2640_v21  ;;  %v2653_v2 = vrot.slane %v5857_v26, %v2652_v24  ;;  %v2649_v3 = vrot.slane %v5857_v26, %v2648_v63  ;;  %v4992_v24 = vld [vmem:[%s6275_s9 + $0x18] sm:$0xff]  }
 0x448   : > { %v2661_v29 = vrot.slane %v5857_v26, %v2660_v0  ;;  %4297 = vmatpush3.bf16.msra.mxu0 %v4992_v24  ;;  %v4940_v63 = vld [vmem:[%s6273_s7 + $0x310] ss:$8 sps:$4 sm:$0xff]   ;;  %v4945_v0 = vld [vmem:[%s6273_s7 + $0x324] ss:$8 sps:$4 sm:$0xff]   ;;  %v4978_v24 = vld [vmem:[%s6273_s7 + $0x3d4] ss:$8 sps:$4 sm:$0xff]  }
 0x449   : > { %v2679_v28 = vpack.c.bf16 %v2645_v22, %v2645_v22  ;;  %v2678_v30 = vpack.c.bf16 %v2641_v27, %v2641_v27  ;;  %v2681_v23 = vpack.c.bf16 %v2653_v2, %v2653_v2  ;;  %v2680_v8 = vpack.c.bf16 %v2649_v3, %v2649_v3  ;;  %v4993_v22 = vld [vmem:[%s6275_s9 + $0x60] sm:$0xff]   ;;  %v4906_v2 = vld [vmem:[%s6273_s7 + $0x254] ss:$8 sps:$4 sm:$0xff]  }
 0x44a   : > { %v2683_v10 = vpack.c.bf16 %v2661_v29, %v2661_v29  ;;  %v4901_v27 = vld [vmem:[%s6273_s7 + $0x240] ss:$8 sps:$4 sm:$0xff]   ;;  %4298 = vmatprep.subr.bf16.mxu0 %v4993_v22  ;;  %v4948_v3 = vld [vmem:[%s6273_s7 + $0x334] ss:$8 sps:$4 sm:$0xff]   ;;  %v4951_v29 = vld [vmem:[%s6273_s7 + $0x344] ss:$8 sps:$4 sm:$0xff]  }
 0x44b   : > { %3498 = vmatprep.mubr.bf16.mxu1 %v2679_v28  ;;  %v4994_v28 = vld [vmem:[%s6275_s9 + $0x20] sm:$0xff]   ;;  %v4976_v22 = vld [vmem:[%s6273_s7 + $0x3d0] ss:$8 sps:$4 sm:$0xff]  }
 0x44c   : > { %3499 = vmatmul.mubr.bf16.vlgmr.msra.gmra.mrb[44].mxu1 %v2678_v30  ;;  %v4904_v30 = vld [vmem:[%s6273_s7 + $0x250] ss:$8 sps:$4 sm:$0xff]   ;;  %4299 = vmatpush3.bf16.msra.mxu0 %v4994_v28  ;;  %v4984_v28 = vld [vmem:[%s6273_s7 + $0x3f4] ss:$8 sps:$4 sm:$0xff]  }
 0x44d   : > { %3508 = vmatpush1.bf16.msra.mxu1 %v4841_v25  ;;  %3539 = vmatprep.mubr.bf16.mxu1 %v2681_v23  ;;  %v4995_v25 = vld [vmem:[%s6275_s9 + $0x68] sm:$0xff]  }
 0x44e   : > { %3509 = vmatprep.subr.bf16.mxu1 %v4846_v31  ;;  %v4909_v31 = vld [vmem:[%s6273_s7 + $0x264] ss:$8 sps:$4 sm:$0xff]   ;;  %4300 = vmatprep.subr.bf16.mxu0 %v4995_v25  ;;  %v2664_v25 = vsub.s32 6, %v5765_v36 }
 0x44f   : > { %v4996_v23 = vld [vmem:[%s6275_s9 + $0x28] sm:$0xff]  }
 0x450   : > { %4301 = vmatpush3.bf16.msra.mxu0 %v4996_v23 }
 0x451   : > { %3510 = vmatpush1.bf16.msra.mxu1 %v4844_v32  ;;  %v4907_v32 = vld [vmem:[%s6273_s7 + $0x260] ss:$8 sps:$4 sm:$0xff]  }
 0x452   : > { %3511 = vmatprep.subr.bf16.mxu1 %v4849_v33  ;;  %v4912_v33 = vld [vmem:[%s6273_s7 + $0x274] ss:$8 sps:$4 sm:$0xff]  }
 0x455   : > { %3512 = vmatpush1.bf16.msra.mxu1 %v4847_v34  ;;  %v4910_v34 = vld [vmem:[%s6273_s7 + $0x270] ss:$8 sps:$4 sm:$0xff]  }
 0x456   : > { %3513 = vmatprep.subr.bf16.mxu1 %v4852_v35  ;;  %v4915_v35 = vld [vmem:[%s6273_s7 + $0x284] ss:$8 sps:$4 sm:$0xff]  }
 0x459   : > { %3514 = vmatpush1.bf16.msra.mxu1 %v4850_v37  ;;  %v4913_v37 = vld [vmem:[%s6273_s7 + $0x280] ss:$8 sps:$4 sm:$0xff]  }
 0x45a   : > { %3515 = vmatprep.subr.bf16.mxu1 %v4855_v39  ;;  %v4918_v39 = vld [vmem:[%s6273_s7 + $0x294] ss:$8 sps:$4 sm:$0xff]  }
 0x45d   : > { %3516 = vmatpush1.bf16.msra.mxu1 %v4853_v40  ;;  %v4916_v40 = vld [vmem:[%s6273_s7 + $0x290] ss:$8 sps:$4 sm:$0xff]  }
 0x45e   : > { %3517 = vmatprep.subr.bf16.mxu1 %v4858_v41  ;;  %v4921_v41 = vld [vmem:[%s6273_s7 + $0x2a4] ss:$8 sps:$4 sm:$0xff]  }
 0x461   : > { %3518 = vmatpush1.bf16.msra.mxu1 %v4856_v38  ;;  %v4919_v38 = vld [vmem:[%s6273_s7 + $0x2a0] ss:$8 sps:$4 sm:$0xff]  }
 0x462   : > { %3519 = vmatprep.subr.bf16.mxu1 %v4861_v42  ;;  %v4924_v42 = vld [vmem:[%s6273_s7 + $0x2b4] ss:$8 sps:$4 sm:$0xff]  }
 0x465   : > { %3520 = vmatpush1.bf16.msra.mxu1 %v4859_v44  ;;  %v4922_v44 = vld [vmem:[%s6273_s7 + $0x2b0] ss:$8 sps:$4 sm:$0xff]  }
 0x466   : > { %3521 = vmatprep.subr.bf16.mxu1 %v4864_v45  ;;  %v4927_v45 = vld [vmem:[%s6273_s7 + $0x2c4] ss:$8 sps:$4 sm:$0xff]  }
 0x469   : > { %3522 = vmatpush1.bf16.msra.mxu1 %v4862_v46  ;;  %v4925_v46 = vld [vmem:[%s6273_s7 + $0x2c0] ss:$8 sps:$4 sm:$0xff]  }
 0x46a   : > { %3523 = vmatprep.subr.bf16.mxu1 %v4867_v43  ;;  %v4930_v43 = vld [vmem:[%s6273_s7 + $0x2d4] ss:$8 sps:$4 sm:$0xff]  }
 0x46d   : > { %3524 = vmatpush1.bf16.msra.mxu1 %v4865_v47  ;;  %v4928_v47 = vld [vmem:[%s6273_s7 + $0x2d0] ss:$8 sps:$4 sm:$0xff]  }
 0x46e   : > { %3525 = vmatprep.subr.bf16.mxu1 %v4870_v51  ;;  %v4933_v51 = vld [vmem:[%s6273_s7 + $0x2e4] ss:$8 sps:$4 sm:$0xff]  }
 0x471   : > { %3526 = vmatpush1.bf16.msra.mxu1 %v4868_v52  ;;  %v4931_v52 = vld [vmem:[%s6273_s7 + $0x2e0] ss:$8 sps:$4 sm:$0xff]  }
 0x472   : > { %3527 = vmatprep.subr.bf16.mxu1 %v4873_v54  ;;  %v4936_v54 = vld [vmem:[%s6273_s7 + $0x2f4] ss:$8 sps:$4 sm:$0xff]  }
 0x475   : > { %3528 = vmatpush1.bf16.msra.mxu1 %v4871_v55  ;;  %v2656_v55 = vsub.s32 4, %v5765_v36 }
 0x476   : > { %3529 = vmatprep.subr.bf16.mxu1 %v4876_v53  ;;  %v2668_v53 = vsub.s32 7, %v5765_v36  ;;  %v3666_v36 = vld [vmem:[%s6276_s10] sm:$0x1] }
 0x479   : > { %3530 = vmatpush1.bf16.msra.mxu1 %v4874_v50  ;;  %v4934_v50 = vld [vmem:[%s6273_s7 + $0x2f0] ss:$8 sps:$4 sm:$0xff]  }
 0x47a   : > { %3531 = vmatprep.subr.bf16.mxu1 %v4879_v57  ;;  %v2657_v57 = vrot.slane %v5857_v26, %v2656_v55 }
 0x47d   : > { %3532 = vmatpush1.bf16.msra.mxu1 %v4877_v58  ;;  %v4939_v58 = vld [vmem:[%s6273_s7 + $0x304] ss:$8 sps:$4 sm:$0xff]  }
 0x47e   : > { %3533 = vmatprep.subr.bf16.mxu1 %v4882_v59  ;;  %v2669_v59 = vrot.slane %v5857_v26, %v2668_v53 }
 0x481   : > { %3534 = vmatpush1.bf16.msra.mxu1 %v4880_v60  ;;  %v4937_v60 = vld [vmem:[%s6273_s7 + $0x300] ss:$8 sps:$4 sm:$0xff]  }
 0x482   : > { %3535 = vmatprep.subr.bf16.mxu1 %v4885_v56  ;;  %v2682_v56 = vpack.c.bf16 %v2657_v57, %v2657_v57 }
 0x485   : > { %3536 = vmatpush1.bf16.msra.mxu1 %v4883_v61  ;;  %v4942_v61 = vld [vmem:[%s6273_s7 + $0x314] ss:$8 sps:$4 sm:$0xff]  }
 0x486   : > { %3537 = vmatprep.subr.bf16.mxu1 %v4888_v62  ;;  %v2685_v62 = vpack.c.bf16 %v2669_v59, %v2669_v59 }
 0x489   : > { %3538 = vmatpush1.bf16.msra.mxu1 %v4886_v1  ;;  %v4943_v1 = vld [vmem:[%s6273_s7 + $0x320] ss:$8 sps:$4 sm:$0xff]  }
 0x48a   : > { %3548 = vmatprep.subr.bf16.mxu1 %v4891_v4  ;;  %v4946_v4 = vld [vmem:[%s6273_s7 + $0x330] ss:$8 sps:$4 sm:$0xff]  }
 0x48c   : > { %3540 = vmatmul.mubr.bf16.vlgmr.msra.gmra.mrb[44].mxu1 %v2680_v8  ;;  %v4954_v8 = vld [vmem:[%s6273_s7 + $0x354] ss:$8 sps:$4 sm:$0xff]  }
 0x48d   : > { %3549 = vmatpush1.bf16.msra.mxu1 %v4889_v6  ;;  %3580 = vmatprep.mubr.bf16.mxu1 %v2683_v10  ;;  %v4949_v6 = vld [vmem:[%s6273_s7 + $0x340] ss:$8 sps:$4 sm:$0xff]   ;;  %v4957_v10 = vld [vmem:[%s6273_s7 + $0x364] ss:$8 sps:$4 sm:$0xff]  }
 0x48e   : > { %3550 = vmatprep.subr.bf16.mxu1 %v4894_v9  ;;  %v4952_v9 = vld [vmem:[%s6273_s7 + $0x350] ss:$8 sps:$4 sm:$0xff]  }
 0x491   : > { %3551 = vmatpush1.bf16.msra.mxu1 %v4892_v12  ;;  %v4963_v12 = vld [vmem:[%s6273_s7 + $0x384] ss:$8 sps:$4 sm:$0xff]  }
 0x492   : > { %3552 = vmatprep.subr.bf16.mxu1 %v4897_v14  ;;  %v4961_v14 = vld [vmem:[%s6273_s7 + $0x380] ss:$8 sps:$4 sm:$0xff]  }
 0x495   : > { %3553 = vmatpush1.bf16.msra.mxu1 %v4895_v17  ;;  %v4969_v17 = vld [vmem:[%s6273_s7 + $0x3a4] ss:$8 sps:$4 sm:$0xff]  }
 0x496   : > { %3554 = vmatprep.subr.bf16.mxu1 %v4900_v49  ;;  %v4967_v49 = vld [vmem:[%s6273_s7 + $0x3a0] ss:$8 sps:$4 sm:$0xff]  }
 0x499   : > { %3555 = vmatpush1.bf16.msra.mxu1 %v4898_v18  ;;  %v4975_v18 = vld [vmem:[%s6273_s7 + $0x3c4] ss:$8 sps:$4 sm:$0xff]  }
 0x49a   : > { %3556 = vmatprep.subr.bf16.mxu1 %v4903_v19  ;;  %v4973_v19 = vld [vmem:[%s6273_s7 + $0x3c0] ss:$8 sps:$4 sm:$0xff]  }
 0x49d   : > { %3557 = vmatpush1.bf16.msra.mxu1 %v4901_v27  ;;  %v4981_v27 = vld [vmem:[%s6273_s7 + $0x3e4] ss:$8 sps:$4 sm:$0xff]  }
 0x49e   : > { %3558 = vmatprep.subr.bf16.mxu1 %v4906_v2  ;;  %v4979_v2 = vld [vmem:[%s6273_s7 + $0x3e0] ss:$8 sps:$4 sm:$0xff]  }
 0x4a1   : > { %3559 = vmatpush1.bf16.msra.mxu1 %v4904_v30  ;;  %v4982_v30 = vld [vmem:[%s6273_s7 + $0x3f0] ss:$8 sps:$4 sm:$0xff]  }
 0x4a2   : > { %3560 = vmatprep.subr.bf16.mxu1 %v4909_v31  ;;  %v2665_v31 = vrot.slane %v5857_v26, %v2664_v25  ;;  %v5000_v26 = vld [vmem:[%s6275_s9 + $0x38] sm:$0xff]  }
 0x4a4   : > { %v2684_v23 = vpack.c.bf16 %v2665_v31, %v2665_v31 }
 0x4a5   : > { %3561 = vmatpush1.bf16.msra.mxu1 %v4907_v32  ;;  %v4997_v32 = vld [vmem:[%s6275_s9 + $0x70] sm:$0xff]  }
 0x4a6   : > { %3562 = vmatprep.subr.bf16.mxu1 %v4912_v33  ;;  %v4998_v33 = vld [vmem:[%s6275_s9 + $0x30] sm:$0xff]   ;;  %4302 = vmatprep.subr.bf16.mxu0 %v4997_v32 }
 0x4a7   : > { %4303 = vmatpush3.bf16.msra.mxu0 %v4998_v33 }
 0x4a9   : > { %3563 = vmatpush1.bf16.msra.mxu1 %v4910_v34  ;;  %v4999_v34 = vld [vmem:[%s6275_s9 + $0x78] sm:$0xff]  }
 0x4aa   : > { %3564 = vmatprep.subr.bf16.mxu1 %v4915_v35  ;;  %4304 = vmatprep.subr.bf16.mxu0 %v4999_v34  ;;  %v2814_v35 = vld [vmem:[%s6274_s8] sm:$0x3] }
 0x4ab   : > { %4305 = vmatpush3.bf16.msra.mxu0 %v5000_v26 }
 0x4ad   : > { %3565 = vmatpush1.bf16.msra.mxu1 %v4913_v37  ;;  %v3459_v37 = vrot.slane %v2814_v35, %v2640_v21 }
 0x4ae   : > { %3566 = vmatprep.subr.bf16.mxu1 %v4918_v39  ;;  %v3463_v39 = vrot.slane %v2814_v35, %v2644_v20 }
 0x4b1   : > { %3567 = vmatpush1.bf16.msra.mxu1 %v4916_v40 }
 0x4b2   : > { %3568 = vmatprep.subr.bf16.mxu1 %v4921_v41 }
 0x4b5   : > { %3569 = vmatpush1.bf16.msra.mxu1 %v4919_v38 }
 0x4b6   : > { %3570 = vmatprep.subr.bf16.mxu1 %v4924_v42 }
 0x4b9   : > { %3571 = vmatpush1.bf16.msra.mxu1 %v4922_v44 }
 0x4ba   : > { %3572 = vmatprep.subr.bf16.mxu1 %v4927_v45 }
 0x4bd   : > { %3573 = vmatpush1.bf16.msra.mxu1 %v4925_v46 }
 0x4be   : > { %3574 = vmatprep.subr.bf16.mxu1 %v4930_v43 }
 0x4c1   : > { %3575 = vmatpush1.bf16.msra.mxu1 %v4928_v47 }
 0x4c2   : > { %3576 = vmatprep.subr.bf16.mxu1 %v4933_v51 }
 0x4c5   : > { %3577 = vmatpush1.bf16.msra.mxu1 %v4931_v52 }
 0x4c6   : > { %3578 = vmatprep.subr.bf16.mxu1 %v4936_v54 }
 0x4c9   : > { %3579 = vmatpush1.bf16.msra.mxu1 %v4934_v50 }
 0x4ca   : > { %3589 = vmatprep.subr.bf16.mxu1 %v4939_v58 }
 0x4cc   : > { %3581 = vmatmul.mubr.bf16.vlgmr.msra.gmra.mrb[44].mxu1 %v2682_v56 }
 0x4cd   : > { %3590 = vmatpush1.bf16.msra.mxu1 %v4937_v60  ;;  %3621 = vmatprep.mubr.bf16.mxu1 %v2685_v62 }
 0x4ce   : > { %3591 = vmatprep.subr.bf16.mxu1 %v4942_v61 }
 0x4d1   : > { %3592 = vmatpush1.bf16.msra.mxu1 %v4940_v63 }
 0x4d2   : > { %3593 = vmatprep.subr.bf16.mxu1 %v4945_v0 }
 0x4d5   : > { %3594 = vmatpush1.bf16.msra.mxu1 %v4943_v1 }
 0x4d6   : > { %3595 = vmatprep.subr.bf16.mxu1 %v4948_v3 }
 0x4d9   : > { %3596 = vmatpush1.bf16.msra.mxu1 %v4946_v4 }
 0x4da   : > { %3597 = vmatprep.subr.bf16.mxu1 %v4951_v29 }
 0x4dd   : > { %3598 = vmatpush1.bf16.msra.mxu1 %v4949_v6 }
 0x4de   : > { %3599 = vmatprep.subr.bf16.mxu1 %v4954_v8 }
 0x4e1   : > { %3600 = vmatpush1.bf16.msra.mxu1 %v4952_v9 }
 0x4e2   : > { %3601 = vmatprep.subr.bf16.mxu1 %v4957_v10 }
 0x4e5   : > { %3602 = vmatpush1.bf16.msra.mxu1 %v4955_v11 }
 0x4e6   : > { %3603 = vmatprep.subr.bf16.mxu1 %v4960_v13 }
 0x4e9   : > { %3604 = vmatpush1.bf16.msra.mxu1 %v4958_v48 }
 0x4ea   : > { %3605 = vmatprep.subr.bf16.mxu1 %v4963_v12 }
 0x4ed   : > { %3606 = vmatpush1.bf16.msra.mxu1 %v4961_v14 }
 0x4ee   : > { %3607 = vmatprep.subr.bf16.mxu1 %v4966_v15 }
 0x4f1   : > { %3608 = vmatpush1.bf16.msra.mxu1 %v4964_v16 }
 0x4f2   : > { %3609 = vmatprep.subr.bf16.mxu1 %v4969_v17 }
 0x4f5   : > { %3610 = vmatpush1.bf16.msra.mxu1 %v4967_v49 }
 0x4f6   : > { %3611 = vmatprep.subr.bf16.mxu1 %v4972_v5 }
 0x4f9   : > { %3612 = vmatpush1.bf16.msra.mxu1 %v4970_v7 }
 0x4fa   : > { %3613 = vmatprep.subr.bf16.mxu1 %v4975_v18 }
 0x4fd   : > { %3614 = vmatpush1.bf16.msra.mxu1 %v4973_v19 }
 0x4fe   : > { %3615 = vmatprep.subr.bf16.mxu1 %v4978_v24 }
 0x501   : > { %3616 = vmatpush1.bf16.msra.mxu1 %v4976_v22 }
 0x502   : > { %3617 = vmatprep.subr.bf16.mxu1 %v4981_v27 }
 0x505   : > { %3618 = vmatpush1.bf16.msra.mxu1 %v4979_v2 }
 0x506   : > { %3619 = vmatprep.subr.bf16.mxu1 %v4984_v28 }
 0x509   : > { %3620 = vmatpush1.bf16.msra.mxu1 %v4982_v30 }
 0x50c   : > { %3622 = vmatmul.mubr.bf16.vlgmr.msra.gmra.mrb[44].mxu1 %v2684_v23 }
 0x5df   : > { %v3623_v40 = vpop.f32.mrb[44].mxu1 }
 0x5e0   : > { %v4620_v41 = vadd.f32 %v3623_v40, %v3459_v37  ;;  %v3625_v38 = vpop.f32.mrb[45].mxu1 }
 0x5e1   : > { %v4621_v42 = vadd.f32 %v3625_v38, %v3463_v39  ;;  %v3627_v44 = vpop.f32.mrb[46].mxu1 }
 0x5e2   : > { %v3630_v45 = vmax.f32 %v4620_v41, 0.0  ;;  %v3628_v46 = vpop.f32.mrb[47].mxu1 }
 0x5e3   : > { %v3631_v43 = vmax.f32 %v4621_v42, 0.0 }
 0x5e4   : > { %v3632_v51 = vpack.c.bf16 %v3630_v45, %v3630_v45 }
 0x5e5   : > { %v3633_v47 = vpack.c.bf16 %v3631_v43, %v3631_v43 }
 0x5e7   : > { %3795 = vmatprep.mubr.bf16.mxu0 %v3633_v47 }
 0x5e8   : > { %3796 = vmatmul.mubr.bf16.vlgmr.msra.gmra.mrb[72].mxu0 %v3632_v51 }
 0x6bb   : > { %v4306_v52 = vpop.f32.mrb[72].mxu0 }
 0x6bc   : > { %v4307_v20 = vpop.f32.mrb[73].mxu0 }
 0x6bd   : > { %v4308_v21 = vadd.f32 %v4307_v20, %v4306_v52  ;;  %v4309_v54 = vpop.f32.mrb[74].mxu0 }
 0x6be   : > { %v4310_v55 = vpop.f32.mrb[75].mxu0 }
 0x6bf   : > { %v3798_v53 = vadd.f32 %v4308_v21, %v3666_v36 }
 0x6c1   : > { %3804 = vst.msk [vmem:[%s378_s29] sm:$0x1] %vm3803_vm8, %v3798_v53 }
 0x6c2   : > { %5014 = shalt.err (!%p5011_p3)
}
 0x6c3   : > { %s5015_s15 = scalar_lea.hbm %s6224_s13, 16  ;;  %s5019_s16 = scalar_lea.hbm %s6277_s11, 32 }
 0x6c4   : > { %p5016_p4 = scmp.ne.s32.totalorder %s6224_s13, %s5015_s15  ;;  %p5020_p9 = scmp.lt.u32.totalorder %s6224_s13, %s6277_s11 }
 0x6c5   : > { %p5021_p10 = scmp.lt.u32.totalorder %s5019_s16, %s5015_s15  ;;  %p5023_p12 = scmp.lt.u32.totalorder %s5015_s15, %s6224_s13 }
 0x6c6   : > { %p5017_p7 = pnand %p5016_p4, %p5168_p5 }
 0x6c7   : > { %p5022_p11 = por %p5021_p10, %p5020_p9 }
 0x6c8   : > { %p5018_p8 = pneg %p5017_p7 }
 0x6c9   : > { %p5024_p13 = por %p5023_p12, %p5022_p11 }
 0x6cb   : > { %p5025_p0 = pnand %p5024_p13, %p5018_p8 }
 0x6cd   : > { %5028 = shalt.err (!%p5025_p0)
}
 0x6ce   : > { %4666 = dma.vmem_to_hbm [thread:$0]  (%p5168_p5), %s6226_s30, 16, %s6224_s13, %s3806_s14  }
 0x6cf PF: > { %p4672_p1 = scmp.ge.s32.totalorder %s5063_s20, 2  ;;  %s3830_s0 = sand.u32 1, %s5051_s17  }
 0x6d0   : > { %s3831_s21 = scalar_lea.sflag [#allocation7], %s3830_s0 }
 0x6d1   : > { %p4669_p2 = pnand %p4672_p1, %p5172_p6 }
 0x6d3   : > { %5046 = dma.done.wait (!%p4669_p2), %s3831_s21, 16  }
 0x6d4   : > { %5048 = vsyncadd (!%p4669_p2), %s3831_s21, 4294967280  ;;  %p21_p3 = scmp.ge.s32.totalorder %s5155_s23, 4   ;;  %s6286_s17 = smov %s5055_s18 }
 0x6d5   : > { %s6287_s18 = smov %s5059_s19  ;;  %s6288_s19 = smov %s5166_s26 }
 0x6d6   : > { %s6289_s20 = smov %s5155_s23  ;;  %23 = sbr.rel (!%p21_p3) target bundleno = 5 (0x5), region = 99 }
 0x6dd   :  { %3835 = vsyncpa [#allocation7], 1 }
 0x6de   :  { %3837 = vsyncpa [#allocation7 + $0x1], 1 }

</bundles_post_ra>
